<compile_context>
chip_gen: v5e
topology: v5e:2x2
jax: 0.10.0
libtpu: 0.0.40
codegen_flags: <defaults>
</compile_context>

<pallas_src>
import functools
import numpy as np
import jax
import jax.numpy as jnp
from jax import lax
from jax.experimental import pallas as pl
from jax.experimental.pallas import tpu as pltpu

FILTER_SIZES = (2, 3, 4)
NUM_FILTERS = 3
IN_FEATURE = NUM_FILTERS * len(FILTER_SIZES)   # 9
GROUP = 16            # lanes reserved per pooling-window group (>= IN_FEATURE + 1)


def _round_up(x, m):
    return (x + m - 1) // m * m


def _textcnn_kernel(tok_ref, w_ref, out_ref, *, L, Vp, G, NW, W_LANES, NCP):
    """tok_ref: (TB, L) i32; w_ref: (ROWS, W_LANES) f32; out_ref: (NCP, TB) f32."""
    toks = tok_ref[...]                                   # (TB, L) int32
    TB = toks.shape[0]
    m_rows = L * Vp

    # --- Fused embedding gather + banded conv, all windows / filter sizes ---
    # The embedding table was folded into per-position tables M_l = E @ band_l
    # on the host, so the gather becomes a one-hot matmul on the MXU:
    #   y[b, :] = sum_l M_l[tok[b, l], :]   (+ conv bias)
    iota_v = lax.broadcasted_iota(jnp.int32, (TB, Vp), 1)
    y = None
    for l in range(L):
        onehot = (toks[:, l:l + 1] == iota_v).astype(jnp.float32)     # (TB, Vp)
        m_l = w_ref[l * Vp:(l + 1) * Vp, :]                           # (Vp, W_LANES)
        part = jnp.dot(onehot, m_l, preferred_element_type=jnp.float32)
        y = part if y is None else y + part

    conv_b = w_ref[m_rows + NCP:m_rows + NCP + 1, :]                  # (1, W_LANES)
    # NOTE (correctness invariant): padded window groups / unused lanes were
    # packed so they contribute exactly 0, and post-ReLU real values are >= 0,
    # so the padding can never win the max below.  This breaks if the
    # activation is changed to one that can be negative (leaky ReLU, GELU, ...).
    y = jnp.maximum(y + conv_b, 0.0)                                  # (TB, W_LANES)

    # --- max_pool1d over time: max across the NW groups of G lanes each ---
    if NW > 1 and (NW & (NW - 1)) == 0 and NW * G == W_LANES:
        # log2(NW)-step roll/max tree (XLU slot, separate from VALU/vld).
        m = y
        s = W_LANES // 2
        while s >= G:
            m = jnp.maximum(m, pltpu.roll(m, s, axis=1))
            s //= 2
        feats = m[:, 0:G]
    else:
        feats = y[:, 0:G]
        for t in range(1, NW):
            feats = jnp.maximum(feats, y[:, t * G:(t + 1) * G])
    # feats: (TB, G); cols 0..8 == PyTorch `out`, col G-1 == 1.0 (fc-bias feature)

    # --- self.fc(out), stored transposed (NCP, TB): lane-dense writeback that
    # only carries the num_class useful channels (fc bias folded via col G-1).
    fc_w = w_ref[m_rows:m_rows + NCP, 0:G]                            # (NCP, G)
    out_ref[...] = lax.dot_general(
        fc_w, feats,
        dimension_numbers=(((1,), (1,)), ((), ())),
        preferred_element_type=jnp.float32)                           # (NCP, TB)


def pack_params(params, seq_len):
    """Host-side, one-time packing of all weights into a single lane-dense slab."""
    E = np.asarray(params["embedding"], np.float32)       # (V, D)
    V, D = E.shape
    num_class = int(np.asarray(params["fc_b"]).shape[0])
    L = int(seq_len)
    G = GROUP
    assert G >= IN_FEATURE + 1, "GROUP must leave a spare lane for the fc bias feature"

    max_t = L - min(FILTER_SIZES) + 1
    assert max_t >= 1, "seq_len too short for the smallest filter"
    NW = _round_up(max_t * G, 128) // G                   # window groups (lane-dense)
    W_LANES = NW * G
    Vp = _round_up(V, 8)                                  # sublane-aligned vocab rows
    NCP = _round_up(num_class, 8)                         # sublane-aligned class rows

    # Banded conv weight over the flattened (L*D) embedding, all filter sizes.
    conv_w = np.zeros((L * D, W_LANES), np.float32)
    conv_b = np.zeros((W_LANES,), np.float32)
    for i, k in enumerate(FILTER_SIZES):
        wk = np.asarray(params["conv_w"][i], np.float32).reshape(NUM_FILTERS, k * D)
        bk = np.asarray(params["conv_b"][i], np.float32)
        T = L - k + 1
        for t in range(T):
            cols = t * G + i * NUM_FILTERS + np.arange(NUM_FILTERS)
            conv_w[t * D:(t + k) * D, cols] = wk.T        # window t, filters of size k
            conv_b[cols] = bk
    conv_b[np.arange(NW) * G + (G - 1)] = 1.0             # constant-1 fc-bias feature

    # Fold the embedding table into per-position tables: M_l = E @ band_l.
    # TODO(synk): for large vocab / seq_len this slab scales as O(L * V * L * G);
    # keep E in HBM and DMA-gather rows (or tile a K reduction grid axis) instead.
    m_tab = np.zeros((L * Vp, W_LANES), np.float32)
    for l in range(L):
        m_tab[l * Vp:l * Vp + V, :] = E @ conv_w[l * D:(l + 1) * D, :]

    # fc weight with bias folded into the constant-1 feature column.
    fc_w = np.zeros((NCP, G), np.float32)
    fc_w[:num_class, :IN_FEATURE] = np.asarray(params["fc_w"], np.float32)
    fc_w[:num_class, G - 1] = np.asarray(params["fc_b"], np.float32)

    rows = _round_up(L * Vp + NCP + 1, 8)
    w_slab = np.zeros((rows, W_LANES), np.float32)
    w_slab[:L * Vp] = m_tab
    w_slab[L * Vp:L * Vp + NCP, :G] = fc_w
    w_slab[L * Vp + NCP] = conv_b

    slab_bytes = w_slab.size * 4
    assert slab_bytes < 8 * 1024 * 1024, (
        "resident weight slab too large for VMEM -- re-tile (see TODO above)")

    meta = dict(L=L, D=D, Vp=Vp, G=G, NW=NW, W_LANES=W_LANES, NCP=NCP,
                num_class=num_class, rows=rows, slab_bytes=slab_bytes)
    return jnp.asarray(w_slab), meta


def textcnn_attn_forward(text, w_slab, meta, *, block_b=1024):
    tokens = jnp.asarray(text[0], jnp.int32)              # (B, L) == PyTorch `text[0]`
    B, L = tokens.shape
    assert L == meta["L"], "w_slab was packed for a different seq_len"
    G, NW, W_LANES = meta["G"], meta["NW"], meta["W_LANES"]
    Vp, NCP, num_class, rows = meta["Vp"], meta["NCP"], meta["num_class"], meta["rows"]

    # Batch tile: multiple of 128 so the transposed (NCP, TB) output stays
    # lane-dense; cap at ~B/2 so moderate batches still give >=2 grid steps
    # for v7x's two TensorCores (no-op on v5e/v6e).
    TB = max(128, min(_round_up(block_b, 128), _round_up(-(-B // 2), 128)))
    Bp = _round_up(max(B, TB), TB)
    if Bp != B:
        tokens = jnp.pad(tokens, ((0, Bp - B), (0, 0)))

    kernel = functools.partial(_textcnn_kernel, L=L, Vp=Vp, G=G,
                               NW=NW, W_LANES=W_LANES, NCP=NCP)
    out_t = pl.pallas_call(
        kernel,
        out_shape=jax.ShapeDtypeStruct((NCP, Bp), jnp.float32),
        grid=(Bp // TB,),
        in_specs=[
            pl.BlockSpec((TB, L), lambda i: (i, 0)),            # token ids (only stream)
            pl.BlockSpec((rows, W_LANES), lambda i: (0, 0)),    # resident weight slab
        ],
        out_specs=pl.BlockSpec((NCP, TB), lambda i: (0, i)),    # transposed, lane-dense
        compiler_params=pltpu.CompilerParams(
            dimension_semantics=("parallel",),
            vmem_limit_bytes=32 * 1024 * 1024),
    )(tokens, w_slab)
    return out_t[:num_class, :B].T                              # (B, num_class)


def reference_forward(text, params):
    """Pure-JAX reference mirroring the PyTorch forward (NCHW conv)."""
    tokens = text[0]
    emb = params["embedding"][tokens]                  # (B, L, D)
    x = emb[:, None, :, :]                             # (B, 1, L, D) NCHW
    feats = []
    for i, _k in enumerate(FILTER_SIZES):
        w = params["conv_w"][i]                        # (nf, 1, k, D) OIHW
        b = params["conv_b"][i]
        y = lax.conv_general_dilated(x, w, (1, 1), "VALID",
                                     dimension_numbers=("NCHW", "OIHW", "NCHW"))
        y = jnp.maximum(y + b[None, :, None, None], 0.0)[:, :, :, 0]   # (B, nf, T)
        feats.append(jnp.max(y, axis=2))               # (B, nf)
    out = jnp.concatenate(feats, axis=1)               # (B, 9)
    return out @ params["fc_w"].T + params["fc_b"]


if __name__ == "__main__":
    vocab_size, embed_dim, num_class = 50, 16, 4
    B, L = 2, 8

    key = jax.random.PRNGKey(0)
    ks = jax.random.split(key, 16)

    def uni(k, shape, fan_in):
        bound = 1.0 / (float(fan_in) ** 0.5)
        return jax.random.uniform(k, shape, jnp.float32, -bound, bound)

    params = {
        "embedding": jax.random.normal(ks[0], (vocab_size, embed_dim), jnp.float32),
        "conv_w": [uni(ks[1 + i], (NUM_FILTERS, 1, k, embed_dim), k * embed_dim)
                   for i, k in enumerate(FILTER_SIZES)],
        "conv_b": [uni(ks[4 + i], (NUM_FILTERS,), k * embed_dim)
                   for i, k in enumerate(FILTER_SIZES)],
        # Attention sub-module parameters exist in the PyTorch model but never
        # influence forward()'s return value (the attn result is discarded), so
        # they are intentionally not packed into the kernel.
        "attn_q_w": uni(ks[7], (IN_FEATURE, IN_FEATURE), IN_FEATURE),
        "attn_k_w": uni(ks[8], (IN_FEATURE, IN_FEATURE), IN_FEATURE),
        "attn_v_w": uni(ks[9], (IN_FEATURE, IN_FEATURE), IN_FEATURE),
        "attn_fc_w": uni(ks[10], (IN_FEATURE, IN_FEATURE), IN_FEATURE),
        "attn_fc_b": uni(ks[11], (IN_FEATURE,), IN_FEATURE),
        "fc_w": uni(ks[12], (num_class, IN_FEATURE), IN_FEATURE),
        "fc_b": uni(ks[13], (num_class,), IN_FEATURE),
    }

    tokens = jax.random.randint(ks[14], (B, L), 0, vocab_size, dtype=jnp.int32)
    lengths = jnp.full((B,), L, dtype=jnp.int32)
    text = (tokens, lengths)   # mimics torchtext (data, lengths); forward uses text[0]

    w_slab, meta = pack_params(params, L)
    logits = jax.block_until_ready(textcnn_attn_forward(text, w_slab, meta))
    ref = reference_forward(text, params)

    assert logits.shape == (B, num_class)
    assert jnp.allclose(logits, ref, atol=1e-4, rtol=1e-4)
    print("KERNEL_OK")
</pallas_src>

<mosaic_0001>
module attributes {stable_mosaic.version = 11 : i64} {
  func.func @_textcnn_kernel(%arg0: i32, %arg1: memref<128x8xi32, #tpu.memory_space<vmem>>, %arg2: memref<464x128xf32, #tpu.memory_space<vmem>>, %arg3: memref<8x128xf32, #tpu.memory_space<vmem>>) attributes {dimension_semantics = [#tpu.dimension_semantics<parallel>], iteration_bounds = array<i64: 1>, scalar_prefetch = 0 : i64, scratch_operands = 0 : i64, tpu.core_type = #tpu.core_type<tc>, window_params = [{transform_indices = @transform_0, window_bounds = array<i64: 128, 8>}, {pipeline_mode = #tpu.pipeline_mode<synchronous>, transform_indices = @transform_1, window_bounds = array<i64: 464, 128>}, {transform_indices = @transform_2, window_bounds = array<i64: 8, 128>}]} {
    %c0 = arith.constant 0 : index
    %c0_0 = arith.constant 0 : index
    %0 = vector.load %arg1[%c0, %c0_0] : memref<128x8xi32, #tpu.memory_space<vmem>>, vector<128x8xi32>
    %1 = tpu.iota {dimensions = array<i32: 1>} : vector<128x56xi32>
    %2 = vector.extract_strided_slice %0 {offsets = [0, 0], sizes = [128, 1], strides = [1, 1]} : vector<128x8xi32> to vector<128x1xi32>
    %3 = vector.broadcast %2 : vector<128x1xi32> to vector<128x56xi32>
    %4 = arith.cmpi eq, %3, %1 : vector<128x56xi32>
    %5 = arith.extui %4 : vector<128x56xi1> to vector<128x56xi32>
    %6 = arith.sitofp %5 : vector<128x56xi32> to vector<128x56xf32>
    %c0_1 = arith.constant 0 : index
    %c0_2 = arith.constant 0 : index
    %7 = vector.load %arg2[%c0_1, %c0_2] : memref<464x128xf32, #tpu.memory_space<vmem>>, vector<56x128xf32>
    %cst = arith.constant dense<0.000000e+00> : vector<128x128xf32>
    %8 = tpu.matmul %6, %7, %cst {dimension_numbers = #tpu.dot_dimension_numbers<[1], [0], [0], [1], [0, 0, 1, 1], [], []>} : vector<128x56xf32>, vector<56x128xf32>, vector<128x128xf32> -> vector<128x128xf32>
    %9 = vector.extract_strided_slice %0 {offsets = [0, 1], sizes = [128, 1], strides = [1, 1]} : vector<128x8xi32> to vector<128x1xi32>
    %10 = vector.broadcast %9 : vector<128x1xi32> to vector<128x56xi32>
    %11 = arith.cmpi eq, %10, %1 : vector<128x56xi32>
    %12 = arith.extui %11 : vector<128x56xi1> to vector<128x56xi32>
    %13 = arith.sitofp %12 : vector<128x56xi32> to vector<128x56xf32>
    %c56 = arith.constant 56 : index
    %c0_3 = arith.constant 0 : index
    %14 = vector.load %arg2[%c56, %c0_3] : memref<464x128xf32, #tpu.memory_space<vmem>>, vector<56x128xf32>
    %cst_4 = arith.constant dense<0.000000e+00> : vector<128x128xf32>
    %15 = tpu.matmul %13, %14, %cst_4 {dimension_numbers = #tpu.dot_dimension_numbers<[1], [0], [0], [1], [0, 0, 1, 1], [], []>} : vector<128x56xf32>, vector<56x128xf32>, vector<128x128xf32> -> vector<128x128xf32>
    %16 = arith.addf %8, %15 : vector<128x128xf32>
    %17 = vector.extract_strided_slice %0 {offsets = [0, 2], sizes = [128, 1], strides = [1, 1]} : vector<128x8xi32> to vector<128x1xi32>
    %18 = vector.broadcast %17 : vector<128x1xi32> to vector<128x56xi32>
    %19 = arith.cmpi eq, %18, %1 : vector<128x56xi32>
    %20 = arith.extui %19 : vector<128x56xi1> to vector<128x56xi32>
    %21 = arith.sitofp %20 : vector<128x56xi32> to vector<128x56xf32>
    %c112 = arith.constant 112 : index
    %c0_5 = arith.constant 0 : index
    %22 = vector.load %arg2[%c112, %c0_5] : memref<464x128xf32, #tpu.memory_space<vmem>>, vector<56x128xf32>
    %cst_6 = arith.constant dense<0.000000e+00> : vector<128x128xf32>
    %23 = tpu.matmul %21, %22, %cst_6 {dimension_numbers = #tpu.dot_dimension_numbers<[1], [0], [0], [1], [0, 0, 1, 1], [], []>} : vector<128x56xf32>, vector<56x128xf32>, vector<128x128xf32> -> vector<128x128xf32>
    %24 = arith.addf %16, %23 : vector<128x128xf32>
    %25 = vector.extract_strided_slice %0 {offsets = [0, 3], sizes = [128, 1], strides = [1, 1]} : vector<128x8xi32> to vector<128x1xi32>
    %26 = vector.broadcast %25 : vector<128x1xi32> to vector<128x56xi32>
    %27 = arith.cmpi eq, %26, %1 : vector<128x56xi32>
    %28 = arith.extui %27 : vector<128x56xi1> to vector<128x56xi32>
    %29 = arith.sitofp %28 : vector<128x56xi32> to vector<128x56xf32>
    %c168 = arith.constant 168 : index
    %c0_7 = arith.constant 0 : index
    %30 = vector.load %arg2[%c168, %c0_7] : memref<464x128xf32, #tpu.memory_space<vmem>>, vector<56x128xf32>
    %cst_8 = arith.constant dense<0.000000e+00> : vector<128x128xf32>
    %31 = tpu.matmul %29, %30, %cst_8 {dimension_numbers = #tpu.dot_dimension_numbers<[1], [0], [0], [1], [0, 0, 1, 1], [], []>} : vector<128x56xf32>, vector<56x128xf32>, vector<128x128xf32> -> vector<128x128xf32>
    %32 = arith.addf %24, %31 : vector<128x128xf32>
    %33 = vector.extract_strided_slice %0 {offsets = [0, 4], sizes = [128, 1], strides = [1, 1]} : vector<128x8xi32> to vector<128x1xi32>
    %34 = vector.broadcast %33 : vector<128x1xi32> to vector<128x56xi32>
    %35 = arith.cmpi eq, %34, %1 : vector<128x56xi32>
    %36 = arith.extui %35 : vector<128x56xi1> to vector<128x56xi32>
    %37 = arith.sitofp %36 : vector<128x56xi32> to vector<128x56xf32>
    %c224 = arith.constant 224 : index
    %c0_9 = arith.constant 0 : index
    %38 = vector.load %arg2[%c224, %c0_9] : memref<464x128xf32, #tpu.memory_space<vmem>>, vector<56x128xf32>
    %cst_10 = arith.constant dense<0.000000e+00> : vector<128x128xf32>
    %39 = tpu.matmul %37, %38, %cst_10 {dimension_numbers = #tpu.dot_dimension_numbers<[1], [0], [0], [1], [0, 0, 1, 1], [], []>} : vector<128x56xf32>, vector<56x128xf32>, vector<128x128xf32> -> vector<128x128xf32>
    %40 = arith.addf %32, %39 : vector<128x128xf32>
    %41 = vector.extract_strided_slice %0 {offsets = [0, 5], sizes = [128, 1], strides = [1, 1]} : vector<128x8xi32> to vector<128x1xi32>
    %42 = vector.broadcast %41 : vector<128x1xi32> to vector<128x56xi32>
    %43 = arith.cmpi eq, %42, %1 : vector<128x56xi32>
    %44 = arith.extui %43 : vector<128x56xi1> to vector<128x56xi32>
    %45 = arith.sitofp %44 : vector<128x56xi32> to vector<128x56xf32>
    %c280 = arith.constant 280 : index
    %c0_11 = arith.constant 0 : index
    %46 = vector.load %arg2[%c280, %c0_11] : memref<464x128xf32, #tpu.memory_space<vmem>>, vector<56x128xf32>
    %cst_12 = arith.constant dense<0.000000e+00> : vector<128x128xf32>
    %47 = tpu.matmul %45, %46, %cst_12 {dimension_numbers = #tpu.dot_dimension_numbers<[1], [0], [0], [1], [0, 0, 1, 1], [], []>} : vector<128x56xf32>, vector<56x128xf32>, vector<128x128xf32> -> vector<128x128xf32>
    %48 = arith.addf %40, %47 : vector<128x128xf32>
    %49 = vector.extract_strided_slice %0 {offsets = [0, 6], sizes = [128, 1], strides = [1, 1]} : vector<128x8xi32> to vector<128x1xi32>
    %50 = vector.broadcast %49 : vector<128x1xi32> to vector<128x56xi32>
    %51 = arith.cmpi eq, %50, %1 : vector<128x56xi32>
    %52 = arith.extui %51 : vector<128x56xi1> to vector<128x56xi32>
    %53 = arith.sitofp %52 : vector<128x56xi32> to vector<128x56xf32>
    %c336 = arith.constant 336 : index
    %c0_13 = arith.constant 0 : index
    %54 = vector.load %arg2[%c336, %c0_13] : memref<464x128xf32, #tpu.memory_space<vmem>>, vector<56x128xf32>
    %cst_14 = arith.constant dense<0.000000e+00> : vector<128x128xf32>
    %55 = tpu.matmul %53, %54, %cst_14 {dimension_numbers = #tpu.dot_dimension_numbers<[1], [0], [0], [1], [0, 0, 1, 1], [], []>} : vector<128x56xf32>, vector<56x128xf32>, vector<128x128xf32> -> vector<128x128xf32>
    %56 = arith.addf %48, %55 : vector<128x128xf32>
    %57 = vector.extract_strided_slice %0 {offsets = [0, 7], sizes = [128, 1], strides = [1, 1]} : vector<128x8xi32> to vector<128x1xi32>
    %58 = vector.broadcast %57 : vector<128x1xi32> to vector<128x56xi32>
    %59 = arith.cmpi eq, %58, %1 : vector<128x56xi32>
    %60 = arith.extui %59 : vector<128x56xi1> to vector<128x56xi32>
    %61 = arith.sitofp %60 : vector<128x56xi32> to vector<128x56xf32>
    %c392 = arith.constant 392 : index
    %c0_15 = arith.constant 0 : index
    %62 = vector.load %arg2[%c392, %c0_15] : memref<464x128xf32, #tpu.memory_space<vmem>>, vector<56x128xf32>
    %cst_16 = arith.constant dense<0.000000e+00> : vector<128x128xf32>
    %63 = tpu.matmul %61, %62, %cst_16 {dimension_numbers = #tpu.dot_dimension_numbers<[1], [0], [0], [1], [0, 0, 1, 1], [], []>} : vector<128x56xf32>, vector<56x128xf32>, vector<128x128xf32> -> vector<128x128xf32>
    %64 = arith.addf %56, %63 : vector<128x128xf32>
    %c456 = arith.constant 456 : index
    %c0_17 = arith.constant 0 : index
    %65 = vector.load %arg2[%c456, %c0_17] : memref<464x128xf32, #tpu.memory_space<vmem>>, vector<1x128xf32>
    %66 = vector.broadcast %65 : vector<1x128xf32> to vector<128x128xf32>
    %67 = arith.addf %64, %66 : vector<128x128xf32>
    %cst_18 = arith.constant 0.000000e+00 : f32
    %68 = vector.broadcast %cst_18 : f32 to vector<128x128xf32>
    %69 = arith.maximumf %67, %68 : vector<128x128xf32>
    %c64_i32 = arith.constant 64 : i32
    %70 = tpu.dynamic_rotate %69 by %c64_i32 dim 1 : vector<128x128xf32>, i32 -> vector<128x128xf32>
    %71 = arith.maximumf %69, %70 : vector<128x128xf32>
    %c32_i32 = arith.constant 32 : i32
    %72 = tpu.dynamic_rotate %71 by %c32_i32 dim 1 : vector<128x128xf32>, i32 -> vector<128x128xf32>
    %73 = arith.maximumf %71, %72 : vector<128x128xf32>
    %c16_i32 = arith.constant 16 : i32
    %74 = tpu.dynamic_rotate %73 by %c16_i32 dim 1 : vector<128x128xf32>, i32 -> vector<128x128xf32>
    %75 = arith.maximumf %73, %74 : vector<128x128xf32>
    %76 = vector.extract_strided_slice %75 {offsets = [0, 0], sizes = [128, 16], strides = [1, 1]} : vector<128x128xf32> to vector<128x16xf32>
    %c448 = arith.constant 448 : index
    %c0_19 = arith.constant 0 : index
    %77 = vector.load %arg2[%c448, %c0_19] : memref<464x128xf32, #tpu.memory_space<vmem>>, vector<8x16xf32>
    %cst_20 = arith.constant dense<0.000000e+00> : vector<8x128xf32>
    %78 = tpu.matmul %77, %76, %cst_20 {dimension_numbers = #tpu.dot_dimension_numbers<[1], [1], [0], [0], [0, 0, 1, 0], [], []>} : vector<8x16xf32>, vector<128x16xf32>, vector<8x128xf32> -> vector<8x128xf32>
    %c0_21 = arith.constant 0 : index
    %c0_22 = arith.constant 0 : index
    %79 = vector.load %arg3[%c0_21, %c0_22] : memref<8x128xf32, #tpu.memory_space<vmem>>, vector<8x128xf32>
    tpu.vector_store %arg3[%c0_21, %c0_22], %78 {strides = array<i32>} : memref<8x128xf32, #tpu.memory_space<vmem>>, vector<8x128xf32>,
    return
  }
  func.func @transform_0(%arg0: i32) -> (i32, i32) {
    %c0_i32 = arith.constant 0 : i32
    %c0_i32_0 = arith.constant 0 : i32
    return %arg0, %c0_i32 : i32, i32
  }
  func.func @transform_1(%arg0: i32) -> (i32, i32) {
    %c0_i32 = arith.constant 0 : i32
    %c0_i32_0 = arith.constant 0 : i32
    %c0_i32_1 = arith.constant 0 : i32
    return %c0_i32, %c0_i32_0 : i32, i32
  }
  func.func @transform_2(%arg0: i32) -> (i32, i32) {
    %c0_i32 = arith.constant 0 : i32
    %c0_i32_0 = arith.constant 0 : i32
    return %c0_i32, %arg0 : i32, i32
  }
}

</mosaic_0001>

<bundles_post_ra>
// kernel: tpu_custom_call.1
= control target key start
LH: loop header
LB: loop body
LE: loop exit
PB: predicated region body
PF: predicated region fallthrough
CT: control target
= control target key end

     0   :  { %7 = vsyncpa [#allocation3], 0  ;;  %s3690_s0 = inlined_call_operand.vmem [shape: s32[128,8], index: 0, kind: input, shape index: {}]   ;;  %s3691_s1 = inlined_call_operand.hbm [shape: f32[464,128], index: 1, kind: input, shape index: {}]   ;;  %s3692_s2 = inlined_call_operand.hbm [shape: f32[8,128], index: 2, kind: output, shape index: {}]  }
   0x1   :  { %8 = vsyncpa [#allocation4], 0  ;;  %s15_s11 = sshll.u32 %s3691_s1, 4  ;;  %s2578_s12 = smov [#allocation2]   ;;  %s16_s11 = int_to_ptr.hbm [resolvable:$true] %s15_s11 }
   0x2   :  { %s17_s13 = sshll.u32 %s2578_s12, 4  ;;  %s2579_s14 = smov 128   ;;  %s18_s13 = int_to_ptr.vmem [resolvable:$true] %s17_s13 }
   0x3   :  { %s2580_s15 = smov 8  }
   0x4   :  { %23 = dma.hbm_to_vmem [thread:$0]  %s16_s11, 7424, %s18_s13, [#allocation3], %s2579_s14, %s2579_s14, %s2580_s15  }
   0x5   :  { %2574 = dma.done.wait [#allocation3], 7424  }
   0x6   :  { %2575 = vsyncadd [#allocation3], 4294959872  ;;  %v2581_v0 = vmov 0   ;;  %v2615_v1 = vld [vmem:[%s3690_s0 + $0x20] sm:$0xff]  ;;  %v2620_v2 = vld [vmem:[%s3690_s0 + $0x10] sm:$0xff]  ;;  %v2582_v17 = vmov 1   ;;  %v44_v30 = vlaneseq }
   0x7   :  { %2431 = vset.pattern.permute.xlu2 %v2581_v0  ;;  %2430 = vset.pattern.permute.xlu1 %v2581_v0  ;;  %v2625_v3 = vld [vmem:[%s3690_s0] sm:$0xff]  ;;  %v2633_v4 = vld [vmem:[%s3690_s0 + $0x28] sm:$0xff]  ;;  %v2638_v5 = vld [vmem:[%s3690_s0 + $0x18] sm:$0xff]  ;;  %v2583_v18 = vmov 2   ;;  %v2584_v25 = vmov 3   ;;  %vm252_vm0 = vcmask 457728  }
   0x8   :  { %2429 = vset.pattern.permute.xlu0 %v2581_v0  ;;  %59 = vperm.xlu2 %2431, %v2615_v1   ;;  %v2643_v6 = vld [vmem:[%s3690_s0 + $0x8] sm:$0xff]  ;;  %v2651_v7 = vld [vmem:[%s3690_s0 + $0x40] sm:$0xff]  ;;  %v2656_v8 = vld [vmem:[%s3690_s0 + $0x38] sm:$0xff]  ;;  %v2750_v32 = vand.u32 127, %v44_v30  ;;  %v2585_v37 = vmov 0.0   ;;  %s2591_s8 = smov 32  }
   0x9   :  { %53 = vperm.xlu1 %2430, %v2620_v2   ;;  %47 = vperm.xlu0 %2429, %v2625_v3   ;;  %v2661_v9 = vld [vmem:[%s3690_s0 + $0x30] sm:$0xff]  ;;  %v2669_v10 = vld [vmem:[%s3690_s0 + $0x58] sm:$0xff]  ;;  %v2679_v12 = vld [vmem:[%s3690_s0 + $0x48] sm:$0xff]  ;;  %s2592_s9 = smov 16   ;;  %s2593_s10 = smov [#allocation5]  }
   0xa   :  { %v2674_v11 = vld [vmem:[%s3690_s0 + $0x50] sm:$0xff]  ;;  %v2692_v14 = vld [vmem:[%s3690_s0 + $0x68] sm:$0xff]  ;;  %v2697_v15 = vld [vmem:[%s3690_s0 + $0x60] sm:$0xff]  ;;  %s2128_s11 = sshll.u32 %s2593_s10, 4  ;;  %s2130_s14 = sshll.u32 %s3692_s2, 4  ;;  %s2129_s11 = int_to_ptr.vmem [resolvable:$true] %s2128_s11  ;;  %s2131_s14 = int_to_ptr.hbm [resolvable:$true] %s2130_s14 }
   0xb   :  { %v2687_v13 = vld [vmem:[%s3690_s0 + $0x70] sm:$0xff]  ;;  %v2705_v16 = vld [vmem:[%s3690_s0 + $0x78] sm:$0xff]  ;;  %v147_v20 = vld [vmem:[#allocation2 + $0x28] sm:$0xff] }
   0xc   :  { %v148_v19 = vld [vmem:[#allocation2 + $0x30] sm:$0xff]  ;;  %v146_v21 = vld [vmem:[#allocation2 + $0x20] sm:$0xff]  ;;  %v145_v22 = vld [vmem:[#allocation2 + $0x18] sm:$0xff] }
   0xd   :  { %423 = vmatpush.msra.mxu1 %v148_v19  ;;  %v144_v23 = vld [vmem:[#allocation2 + $0x10] sm:$0xff]  ;;  %v143_v24 = vld [vmem:[#allocation2 + $0x8] sm:$0xff]  ;;  %v142_v26 = vld [vmem:[#allocation2] sm:$0xff] }
   0xe   :  { %v251_v31 = vld [vmem:[#allocation2 + $0x68] sm:$0xff]  ;;  %v250_v36 = vld [vmem:[#allocation2 + $0x60] sm:$0xff]  ;;  %v249_v39 = vld [vmem:[#allocation2 + $0x58] sm:$0xff] }
   0xf   :  { %424 = vmatpush.msra.mxu1 %v147_v20  ;;  %310 = vmatpush.msra.mxu0 %v251_v31  ;;  %v248_v40 = vld [vmem:[#allocation2 + $0x50] sm:$0xff]  ;;  %v247_v41 = vld [vmem:[#allocation2 + $0x48] sm:$0xff]  ;;  %v246_v45 = vld [vmem:[#allocation2 + $0x40] sm:$0xff] }
  0x10   :  { %62 = vperm.xlu2 %2431, %v2633_v4   ;;  %v245_v47 = vld [vmem:[#allocation2 + $0x38] sm:$0xff]  ;;  %v581_v48 = vld [vmem:[#allocation2 + $0xa0] sm:$0xff]  ;;  %v579_v54 = vld [vmem:[#allocation2 + $0x90] sm:$0xff] }
  0x11   :  { %56 = vperm.xlu1 %2430, %v2638_v5   ;;  %50 = vperm.xlu0 %2429, %v2643_v6   ;;  %v580_v52 = vld [vmem:[#allocation2 + $0x98] sm:$0xff]  ;;  %v578_v55 = vld [vmem:[#allocation2 + $0x88] sm:$0xff]  ;;  %v577_v57 = vld [vmem:[#allocation2 + $0x80] sm:$0xff] }
  0x12   :  { %425 = vmatpush.msra.mxu1 %v146_v21  ;;  %311 = vmatpush.msra.mxu0 %v250_v36  ;;  %v576_v60 = vld [vmem:[#allocation2 + $0x78] sm:$0xff]  ;;  %v575_v62 = vld [vmem:[#allocation2 + $0x70] sm:$0xff]  ;;  %v811_v31 = vld [vmem:[#allocation2 + $0xc8] sm:$0xff] }
  0x13   :  { %639 = vmatpush.msra.mxu2 %v581_v48  ;;  %v813_v21 = vld [vmem:[#allocation2 + $0xd8] sm:$0xff] }
  0x14   :  { %426 = vmatpush.msra.mxu1 %v145_v22  ;;  %312 = vmatpush.msra.mxu0 %v249_v39  ;;  %v808_v39 = vld [vmem:[#allocation2 + $0xb0] sm:$0xff] }
  0x15   :  { %640 = vmatpush.msra.mxu2 %v580_v52  ;;  %871 = vmatpush.msra.mxu3 %v813_v21 }
  0x16   :  { %427 = vmatpush.msra.mxu1 %v144_v23  ;;  %313 = vmatpush.msra.mxu0 %v248_v40 }
  0x17   :  { %641 = vmatpush.msra.mxu2 %v579_v54 }
  0x18   :  { %71 = vperm.xlu2 %2431, %v2651_v7   ;;  %428 = vmatpush.msra.mxu1 %v143_v24 }
  0x19   :  { %68 = vperm.xlu1 %2430, %v2656_v8   ;;  %65 = vperm.xlu0 %2429, %v2661_v9  }
  0x1a   :  { %429 = vmatpush.msra.mxu1 %v142_v26  ;;  %314 = vmatpush.msra.mxu0 %v247_v41  ;;  %v812_v26 = vld [vmem:[#allocation2 + $0xd0] sm:$0xff] }
  0x1b   :  { %642 = vmatpush.msra.mxu2 %v578_v55  ;;  %872 = vmatpush.msra.mxu3 %v812_v26 }
  0x1c   :  { %315 = vmatpush.msra.mxu0 %v246_v45 }
  0x1d   :  { %643 = vmatpush.msra.mxu2 %v577_v57  ;;  %873 = vmatpush.msra.mxu3 %v811_v31 }
  0x1e   :  { %316 = vmatpush.msra.mxu0 %v245_v47 }
  0x1f   :  { %644 = vmatpush.msra.mxu2 %v576_v60 }
  0x20   :  { %80 = vperm.xlu2 %2431, %v2669_v10  }
  0x21   :  { %77 = vperm.xlu1 %2430, %v2674_v11   ;;  %74 = vperm.xlu0 %2429, %v2679_v12  }
  0x22   :  { %645 = vmatpush.msra.mxu2 %v575_v62 }
  0x28   :  { %89 = vperm.xlu2 %2431, %v2687_v13  }
  0x29   :  { %86 = vperm.xlu1 %2430, %v2692_v14   ;;  %83 = vperm.xlu0 %2429, %v2697_v15  }
  0x30   :  { %2433 = vset.pattern.permute.xlu2 %v2582_v17 }
  0x31   :  { %2432 = vset.pattern.permute.xlu1 %v2582_v17  ;;  %92 = vperm.xlu0 %2429, %v2705_v16  }
  0x32   :  { %153 = vperm.xlu2 %2433, %v2643_v6   ;;  %150 = vperm.xlu1 %2432, %v2625_v3  }
  0x39   :  { %2434 = vset.pattern.permute.xlu0 %v2582_v17 }
  0x3a   :  { %162 = vperm.xlu2 %2433, %v2615_v1   ;;  %159 = vperm.xlu1 %2432, %v2638_v5  }
  0x3b   :  { %156 = vperm.xlu0 %2434, %v2620_v2  }
  0x42   :  { %168 = vperm.xlu2 %2433, %v2661_v9   ;;  %165 = vperm.xlu1 %2432, %v2633_v4  }
  0x43   :  { %2435 = vset.pattern.permute.xlu0 %v2583_v18 }
  0x44   :  { %480 = vperm.xlu0 %2435, %v2625_v3  }
  0x4a   :  { %177 = vperm.xlu2 %2433, %v2679_v12   ;;  %174 = vperm.xlu1 %2432, %v2651_v7  }
  0x4c   :  { %495 = vperm.xlu0 %2435, %v2633_v4  }
  0x52   :  { %186 = vperm.xlu2 %2433, %v2697_v15   ;;  %183 = vperm.xlu1 %2432, %v2669_v10  }
  0x54   :  { %510 = vperm.xlu0 %2435, %v2674_v11  }
  0x5a   :  { %2437 = vset.pattern.permute.xlu2 %v2583_v18  ;;  %2436 = vset.pattern.permute.xlu1 %v2584_v25 }
  0x5b   :  { %483 = vperm.xlu2 %2437, %v2643_v6   ;;  %712 = vperm.xlu1 %2436, %v2625_v3  }
  0x5c   :  { %2444 = vset.pattern.permute.xlu0 %v2584_v25 }
  0x5d   :  { %718 = vperm.xlu0 %2444, %v2620_v2  }
  0x62   :  { %v2732_v27 = vpop.permute.xlu2 %59 }
  0x63   :  { %486 = vperm.xlu2 %2437, %v2620_v2   ;;  %715 = vperm.xlu1 %2436, %v2643_v6   ;;  %vm98_vm5 = vcmp.eq.s32.totalorder %v2732_v27, %v2750_v32 }
  0x64   :  { %v2144_v20 = vsel %vm98_vm5, 1.0, %v2585_v37 }
  0x65   :  { %733 = vperm.xlu0 %2444, %v2656_v8  }
  0x6a   :  { %v2737_v28 = vpop.permute.xlu2 %62 }
  0x6b   :  { %2439 = vset.pattern.permute.xlu2 %v2584_v25  ;;  %2438 = vset.pattern.permute.xlu1 %v2583_v18  ;;  %vm99_vm6 = vcmp.eq.s32.totalorder %v2737_v28, %v2750_v32  ;;  %v810_v28 = vld [vmem:[#allocation2 + $0xc0] sm:$0xff] }
  0x6c   :  { %721 = vperm.xlu2 %2439, %v2638_v5   ;;  %489 = vperm.xlu1 %2438, %v2638_v5   ;;  %v2145_v27 = vsel %vm99_vm6, 1.0, %v2585_v37 }
  0x6d   :  { %748 = vperm.xlu0 %2444, %v2697_v15   ;;  %874 = vmatpush.msra.mxu3 %v810_v28 }
  0x72   :  { %v2744_v29 = vpop.permute.xlu2 %71 }
  0x73   :  { %vm102_vm13 = vcmp.eq.s32.totalorder %v2744_v29, %v2750_v32 }
  0x74   :  { %724 = vperm.xlu2 %2439, %v2615_v1   ;;  %492 = vperm.xlu1 %2438, %v2615_v1  }
  0x75   :  { %2447 = vset.pattern.permute.xlu0 %v2582_v17 }
  0x76   :  { %171 = vperm.xlu0 %2447, %v2656_v8  }
  0x7a   :  { %v2752_v33 = vpop.permute.xlu2 %80 }
  0x7b   :  { %v54_v34 = vpop.permute.xlu1 %53  ;;  %v48_v35 = vpop.permute.xlu0 %47 }
  0x7c   :  { %2441 = vset.pattern.permute.xlu2 %v2583_v18  ;;  %vm94_vm1 = vcmp.eq.s32.totalorder %v48_v35, %v2750_v32  ;;  %2440 = vset.pattern.permute.xlu1 %v2584_v25  ;;  %vm96_vm3 = vcmp.eq.s32.totalorder %v54_v34, %v2750_v32  ;;  %v2587_v34 = vmov 6   ;;  %v809_v35 = vld [vmem:[#allocation2 + $0xb8] sm:$0xff] }
  0x7d   :  { %498 = vperm.xlu2 %2441, %v2661_v9   ;;  %v2140_v38 = vsel %vm94_vm1, 1.0, %v2585_v37  ;;  %727 = vperm.xlu1 %2440, %v2633_v4   ;;  %v2142_v53 = vsel %vm96_vm3, 1.0, %v2585_v37 }
  0x7e   :  { %180 = vperm.xlu0 %2447, %v2674_v11   ;;  %2188 = vmatmul.msk.f32.vlgmr.msra.gmra.mxu1 %vm252_vm0, %v2140_v38 }
  0x7f   :  { %875 = vmatpush.msra.mxu3 %v809_v35 }
  0x81   :  { %876 = vmatpush.msra.mxu3 %v808_v39 }
  0x82   :  { %v2762_v42 = vpop.permute.xlu2 %89 }
  0x83   :  { %v57_v43 = vpop.permute.xlu1 %56  ;;  %v51_v44 = vpop.permute.xlu0 %50 }
  0x84   :  { %vm95_vm2 = vcmp.eq.s32.totalorder %v51_v44, %v2750_v32  ;;  %vm97_vm4 = vcmp.eq.s32.totalorder %v57_v43, %v2750_v32  ;;  %v807_v44 = vld [vmem:[#allocation2 + $0xa8] sm:$0xff] }
  0x85   :  { %501 = vperm.xlu2 %2441, %v2656_v8   ;;  %v2141_v46 = vsel %vm95_vm2, 1.0, %v2585_v37  ;;  %730 = vperm.xlu1 %2440, %v2661_v9   ;;  %v2143_v61 = vsel %vm97_vm4, 1.0, %v2585_v37 }
  0x86   :  { %192 = vperm.xlu0 %2447, %v2687_v13   ;;  %2189 = vmatmul.msk.f32.gmra.mxu1 %vm252_vm0, %v2141_v46 }
  0x87   :  { %877 = vmatpush.msra.mxu3 %v807_v44 }
  0x8b   :  { %v2771_v49 = vpop.permute.xlu1 %68  ;;  %v2775_v51 = vpop.permute.xlu0 %65 }
  0x8c   :  { %v2773_v50 = vpop.permute.xlu2 %153  ;;  %vm100_vm8 = vcmp.eq.s32.totalorder %v2775_v51, %v2750_v32  ;;  %vm101_vm11 = vcmp.eq.s32.totalorder %v2771_v49, %v2750_v32  ;;  %v2588_v49 = vmov 4  }
  0x8d   :  { %2443 = vset.pattern.permute.xlu2 %v2584_v25  ;;  %2442 = vset.pattern.permute.xlu1 %v2583_v18  ;;  %vm198_vm9 = vcmp.eq.s32.totalorder %v2773_v50, %v2750_v32  ;;  %v2146_v36 = vsel %vm100_vm8, 1.0, %v2585_v37  ;;  %v2147_v50 = vsel %vm101_vm11, 1.0, %v2585_v37 }
  0x8e   :  { %736 = vperm.xlu2 %2443, %v2651_v7   ;;  %504 = vperm.xlu1 %2442, %v2651_v7   ;;  %v2157_v43 = vsel %vm198_vm9, 1.0, %v2585_v37 }
  0x8f   :  { %2190 = vmatmul.msk.f32.gmra.mxu1 %vm252_vm0, %v2142_v53  ;;  %v2148_v53 = vsel %vm102_vm13, 1.0, %v2585_v37 }
  0x93   :  { %v2784_v56 = vpop.permute.xlu1 %77  ;;  %v2788_v59 = vpop.permute.xlu0 %74 }
  0x94   :  { %v2786_v58 = vpop.permute.xlu2 %162  ;;  %vm103_vm1 = vcmp.eq.s32.totalorder %v2788_v59, %v2750_v32  ;;  %vm104_vm4 = vcmp.eq.s32.totalorder %v2784_v56, %v2750_v32 }
  0x95   :  { %vm201_vm3 = vcmp.eq.s32.totalorder %v2786_v58, %v2750_v32  ;;  %v2149_v57 = vsel %vm103_vm1, 1.0, %v2585_v37  ;;  %v2589_v58 = vmov 7   ;;  %v2150_v21 = vsel %vm104_vm4, 1.0, %v2585_v37 }
  0x96   :  { %739 = vperm.xlu2 %2443, %v2679_v12   ;;  %507 = vperm.xlu1 %2442, %v2679_v12   ;;  %v2586_v12 = vmov 5  }
  0x97   :  { %2191 = vmatmul.msk.f32.gmra.mxu1 %vm252_vm0, %v2143_v61  ;;  %2466 = vset.pattern.permute.xlu0 %v2586_v12 }
  0x98   :  { %1185 = vperm.xlu0 %2466, %v2638_v5  }
  0x9b   :  { %v2796_v63 = vpop.permute.xlu1 %86  ;;  %v2800_v19 = vpop.permute.xlu0 %83 }
  0x9c   :  { %v2798_v0 = vpop.permute.xlu2 %168  ;;  %vm107_vm13 = vcmp.eq.s32.totalorder %v2796_v63, %v2750_v32 }
  0x9d   :  { %vm203_vm8 = vcmp.eq.s32.totalorder %v2798_v0, %v2750_v32 }
  0x9e   :  { %2446 = vset.pattern.permute.xlu2 %v2583_v18  ;;  %2445 = vset.pattern.permute.xlu1 %v2584_v25 }
  0x9f   :  { %2192 = vmatmul.msk.f32.gmra.mxu1 %vm252_vm0, %v2144_v20  ;;  %742 = vperm.xlu1 %2445, %v2674_v11  }
  0xa0   :  { %513 = vperm.xlu2 %2446, %v2669_v10   ;;  %2467 = vset.pattern.permute.xlu0 %v2587_v34 }
  0xa1   :  { %1408 = vperm.xlu0 %2467, %v2625_v3  }
  0xa3   :  { %v2814_v23 = vpop.permute.xlu0 %92 }
  0xa4   :  { %v2812_v22 = vpop.permute.xlu2 %177  ;;  %v151_v24 = vpop.permute.xlu1 %150 }
  0xa5   :  { %vm197_vm7 = vcmp.eq.s32.totalorder %v151_v24, %v2750_v32 }
  0xa6   :  { %v2156_v30 = vsel %vm197_vm7, 1.0, %v2585_v37  ;;  %vm105_vm7 = vcmp.eq.s32.totalorder %v2752_v33, %v2750_v32  ;;  %v2162_v33 = vsel %vm203_vm8, 1.0, %v2585_v37 }
  0xa7   :  { %2193 = vmatmul.msk.f32.gmra.mxu1 %vm252_vm0, %v2145_v27  ;;  %745 = vperm.xlu1 %2445, %v2669_v10   ;;  %v2151_v27 = vsel %vm105_vm7, 1.0, %v2585_v37 }
  0xa8   :  { %2172 = vmatmul.msk.f32.vlgmr.msra.gmra.mxu0 %vm252_vm0, %v2156_v30  ;;  %516 = vperm.xlu2 %2446, %v2697_v15  }
  0xa9   :  { %1423 = vperm.xlu0 %2467, %v2633_v4  }
  0xac   :  { %v2830_v38 = vpop.permute.xlu2 %186  ;;  %v160_v40 = vpop.permute.xlu1 %159 }
  0xad   :  { %v157_v41 = vpop.permute.xlu0 %156  ;;  %vm200_vm15 = vcmp.eq.s32.totalorder %v160_v40, %v2750_v32 }
  0xae   :  { %vm199_vm10 = vcmp.eq.s32.totalorder %v157_v41, %v2750_v32  ;;  %v2159_v55 = vsel %vm200_vm15, 1.0, %v2585_v37 }
  0xaf   :  { %2194 = vmatmul.msk.f32.gmra.mxu1 %vm252_vm0, %v2146_v36  ;;  %2448 = vset.pattern.permute.xlu1 %v2583_v18  ;;  %v2158_v45 = vsel %vm199_vm10, 1.0, %v2585_v37  ;;  %vm106_vm10 = vcmp.eq.s32.totalorder %v2800_v19, %v2750_v32 }
  0xb0   :  { %2173 = vmatmul.msk.f32.gmra.mxu0 %vm252_vm0, %v2157_v43  ;;  %519 = vperm.xlu1 %2448, %v2692_v14  }
  0xb1   :  { %2449 = vset.pattern.permute.xlu2 %v2582_v17  ;;  %2472 = vset.pattern.permute.xlu0 %v2588_v49 }
  0xb2   :  { %189 = vperm.xlu2 %2449, %v2692_v14   ;;  %947 = vperm.xlu0 %2472, %v2643_v6  }
  0xb4   :  { %v166_v46 = vpop.permute.xlu1 %165 }
  0xb5   :  { %v484_v47 = vpop.permute.xlu2 %483  ;;  %vm202_vm5 = vcmp.eq.s32.totalorder %v166_v46, %v2750_v32 }
  0xb6   :  { %v481_v48 = vpop.permute.xlu0 %480  ;;  %vm528_vm14 = vcmp.eq.s32.totalorder %v484_v47, %v2750_v32 }
  0xb7   :  { %vm527_vm12 = vcmp.eq.s32.totalorder %v481_v48, %v2750_v32  ;;  %2195 = vmatmul.msk.f32.gmra.mxu1 %vm252_vm0, %v2147_v50 }
  0xb8   :  { %v2204_v51 = vsel %vm527_vm12, 1.0, %v2585_v37  ;;  %2174 = vmatmul.msk.f32.gmra.mxu0 %vm252_vm0, %v2158_v45  ;;  %2450 = vset.pattern.permute.xlu1 %v2584_v25 }
  0xb9   :  { %2220 = vmatmul.msk.f32.vlgmr.msra.gmra.mxu2 %vm252_vm0, %v2204_v51  ;;  %751 = vperm.xlu1 %2450, %v2692_v14  }
  0xba   :  { %2451 = vset.pattern.permute.xlu2 %v2583_v18  ;;  %v2205_v18 = vsel %vm528_vm14, 1.0, %v2585_v37  ;;  %962 = vperm.xlu0 %2472, %v2661_v9  }
  0xbb   :  { %522 = vperm.xlu2 %2451, %v2687_v13  }
  0xbc   :  { %v2860_v52 = vpop.permute.xlu1 %174 }
  0xbd   :  { %v487_v29 = vpop.permute.xlu2 %486 }
  0xbe   :  { %v2863_v54 = vpop.permute.xlu0 %495  ;;  %vm529_vm2 = vcmp.eq.s32.totalorder %v487_v29, %v2750_v32 }
  0xbf   :  { %2196 = vmatmul.msk.f32.gmra.mxu1 %vm252_vm0, %v2148_v53  ;;  %v2206_v59 = vsel %vm529_vm2, 1.0, %v2585_v37  ;;  %vm108_vm2 = vcmp.eq.s32.totalorder %v2762_v42, %v2750_v32 }
  0xc0   :  { %2175 = vmatmul.msk.f32.gmra.mxu0 %vm252_vm0, %v2159_v55 }
  0xc1   :  { %2221 = vmatmul.msk.f32.gmra.mxu2 %vm252_vm0, %v2205_v18  ;;  %754 = vperm.xlu1 %2450, %v2687_v13   ;;  %v2160_v13 = vsel %vm201_vm3, 1.0, %v2585_v37  ;;  %vm532_vm3 = vcmp.eq.s32.totalorder %v2863_v54, %v2750_v32 }
  0xc2   :  { %2477 = vset.pattern.permute.xlu0 %v2589_v58 }
  0xc3   :  { %525 = vperm.xlu2 %2451, %v2705_v16   ;;  %1646 = vperm.xlu0 %2477, %v2620_v2  }
  0xc4   :  { %v2879_v60 = vpop.permute.xlu1 %183 }
  0xc6   :  { %v2881_v61 = vpop.permute.xlu0 %510  ;;  %v2884_v62 = vpop.permute.xlu2 %721 }
  0xc7   :  { %2197 = vmatmul.msk.f32.gmra.mxu1 %vm252_vm0, %v2149_v57  ;;  %vm762_vm14 = vcmp.eq.s32.totalorder %v2884_v62, %v2750_v32 }
  0xc8   :  { %2176 = vmatmul.msk.f32.gmra.mxu0 %vm252_vm0, %v2160_v13  ;;  %v2239_v63 = vsel %vm762_vm14, 1.0, %v2585_v37 }
  0xc9   :  { %2222 = vmatmul.msk.f32.gmra.mxu2 %vm252_vm0, %v2206_v59  ;;  %2452 = vset.pattern.permute.xlu1 %v2582_v17 }
  0xca   :  { %195 = vperm.xlu1 %2452, %v2705_v16  }
  0xcb   :  { %2453 = vset.pattern.permute.xlu2 %v2584_v25  ;;  %v2161_v25 = vsel %vm202_vm5, 1.0, %v2585_v37  ;;  %1661 = vperm.xlu0 %2477, %v2656_v8   ;;  %v2152_v8 = vsel %vm106_vm10, 1.0, %v2585_v37  ;;  %vm205_vm5 = vcmp.eq.s32.totalorder %v2860_v52, %v2750_v32 }
  0xcc   :  { %757 = vperm.xlu2 %2453, %v2705_v16   ;;  %v2164_v47 = vsel %vm205_vm5, 1.0, %v2585_v37 }
  0xcd   :  { %v713_v20 = vpop.permute.xlu1 %712 }
  0xce   :  { %v2900_v17 = vpop.permute.xlu2 %724  ;;  %vm759_vm6 = vcmp.eq.s32.totalorder %v713_v20, %v2750_v32  ;;  %v1509_v20 = vld [vmem:[#allocation2 + $0x180] sm:$0xff] }
  0xcf   :  { %2198 = vmatmul.msk.f32.gmra.mxu1 %vm252_vm0, %v2150_v21  ;;  %v719_v56 = vpop.permute.xlu0 %718  ;;  %v2236_v24 = vsel %vm759_vm6, 1.0, %v2585_v37  ;;  %vm763_vm4 = vcmp.eq.s32.totalorder %v2900_v17, %v2750_v32  ;;  %vm109_vm6 = vcmp.eq.s32.totalorder %v2814_v23, %v2750_v32  ;;  %1567 = vmatpush.msrb.mxu2 %v1509_v20  ;;  %v1741_v17 = vld [vmem:[#allocation2 + $0x1b8] sm:$0xff] }
  0xd0   :  { %2177 = vmatmul.msk.f32.gmra.mxu0 %vm252_vm0, %v2161_v25  ;;  %2252 = vmatmul.msk.f32.vlgmr.msra.gmra.mxu3 %vm252_vm0, %v2236_v24  ;;  %vm761_vm11 = vcmp.eq.s32.totalorder %v719_v56, %v2750_v32  ;;  %v2240_v45 = vsel %vm763_vm4, 1.0, %v2585_v37  ;;  %v2155_v48 = vsel %vm109_vm6, 1.0, %v2585_v37  ;;  %vm537_vm4 = vcmp.eq.s32.totalorder %v2881_v61, %v2750_v32  ;;  %v1277_v25 = vld [vmem:[#allocation2 + $0x148] sm:$0xff] }
  0xd1   :  { %v2238_v28 = vsel %vm761_vm11, 1.0, %v2585_v37  ;;  %v2214_v56 = vsel %vm537_vm4, 1.0, %v2585_v37  ;;  %1799 = vmatpush.msrb.mxu3 %v1741_v17  ;;  %1335 = vmatpush.msrb.mxu1 %v1277_v25 }
  0xd2   :  { %2454 = vset.pattern.permute.xlu1 %v2588_v49 }
  0xd3   :  { %944 = vperm.xlu1 %2454, %v2625_v3   ;;  %2486 = vset.pattern.permute.xlu0 %v2586_v12 }
  0xd4   :  { %2455 = vset.pattern.permute.xlu2 %v2589_v58  ;;  %1200 = vperm.xlu0 %2486, %v2651_v7   ;;  %v2153_v7 = vsel %vm107_vm13, 1.0, %v2585_v37 }
  0xd5   :  { %1640 = vperm.xlu2 %2455, %v2625_v3   ;;  %v716_v26 = vpop.permute.xlu1 %715 }
  0xd6   :  { %vm760_vm9 = vcmp.eq.s32.totalorder %v716_v26, %v2750_v32 }
  0xd7   :  { %2199 = vmatmul.msk.f32.gmra.mxu1 %vm252_vm0, %v2151_v27  ;;  %v2921_v30 = vpop.permute.xlu0 %733  ;;  %v2923_v0 = vpop.permute.xlu2 %498  ;;  %v2237_v31 = vsel %vm760_vm9, 1.0, %v2585_v37  ;;  %vm206_vm9 = vcmp.eq.s32.totalorder %v2812_v22, %v2750_v32 }
  0xd8   :  { %2178 = vmatmul.msk.f32.gmra.mxu0 %vm252_vm0, %v2162_v33  ;;  %2253 = vmatmul.msk.f32.gmra.mxu3 %vm252_vm0, %v2237_v31  ;;  %vm533_vm8 = vcmp.eq.s32.totalorder %v2923_v0, %v2750_v32  ;;  %v2165_v51 = vsel %vm206_vm9, 1.0, %v2585_v37  ;;  %vm766_vm13 = vcmp.eq.s32.totalorder %v2921_v30, %v2750_v32  ;;  %v1044_v30 = vld [vmem:[#allocation2 + $0x108] sm:$0xff]  ;;  %v1043_v0 = vld [vmem:[#allocation2 + $0x100] sm:$0xff] }
  0xd9   :  { %v2243_v29 = vsel %vm766_vm13, 1.0, %v2585_v37 }
  0xdb   :  { %2456 = vset.pattern.permute.xlu1 %v2586_v12 }
  0xdc   :  { %1176 = vperm.xlu1 %2456, %v2625_v3   ;;  %2491 = vset.pattern.permute.xlu0 %v2587_v34 }
  0xdd   :  { %2457 = vset.pattern.permute.xlu2 %v2587_v34  ;;  %1438 = vperm.xlu0 %2491, %v2674_v11   ;;  %v2209_v11 = vsel %vm532_vm3, 1.0, %v2585_v37  ;;  %vm209_vm3 = vcmp.eq.s32.totalorder %v2830_v38, %v2750_v32  ;;  %v1045_v38 = vld [vmem:[#allocation2 + $0x110] sm:$0xff] }
  0xde   :  { %1411 = vperm.xlu2 %2457, %v2643_v6   ;;  %v490_v35 = vpop.permute.xlu1 %489  ;;  %v2168_v13 = vsel %vm209_vm3, 1.0, %v2585_v37  ;;  %1103 = vmatpush.msrb.mxu0 %v1045_v38 }
  0xdf   :  { %2200 = vmatmul.msk.f32.gmra.mxu1 %vm252_vm0, %v2152_v8  ;;  %v2939_v19 = vpop.permute.xlu0 %748  ;;  %vm530_vm12 = vcmp.eq.s32.totalorder %v490_v35, %v2750_v32  ;;  %v2943_v36 = vpop.permute.xlu2 %501 }
  0xe0   :  { %2254 = vmatmul.msk.f32.gmra.mxu3 %vm252_vm0, %v2238_v28  ;;  %v2207_v3 = vsel %vm530_vm12, 1.0, %v2585_v37  ;;  %vm534_vm12 = vcmp.eq.s32.totalorder %v2943_v36, %v2750_v32  ;;  %1104 = vmatpush.msrb.mxu0 %v1044_v30  ;;  %v1508_v28 = vld [vmem:[#allocation2 + $0x178] sm:$0xff] }
  0xe1   :  { %2223 = vmatmul.msk.f32.gmra.mxu2 %vm252_vm0, %v2207_v3  ;;  %v1042_v36 = vld [vmem:[#allocation2 + $0xf8] sm:$0xff]  ;;  %v1507_v3 = vld [vmem:[#allocation2 + $0x170] sm:$0xff] }
  0xe2   :  { %1105 = vmatpush.msrb.mxu0 %v1043_v0  ;;  %1568 = vmatpush.msrb.mxu2 %v1508_v28 }
  0xe4   :  { %2458 = vset.pattern.permute.xlu1 %v2589_v58  ;;  %1106 = vmatpush.msrb.mxu0 %v1042_v36 }
  0xe5   :  { %1643 = vperm.xlu1 %2458, %v2643_v6   ;;  %2496 = vset.pattern.permute.xlu0 %v2588_v49 }
  0xe6   :  { %2459 = vset.pattern.permute.xlu2 %v2586_v12  ;;  %v493_v39 = vpop.permute.xlu1 %492  ;;  %977 = vperm.xlu0 %2496, %v2669_v10   ;;  %v2210_v10 = vsel %vm533_vm8, 1.0, %v2585_v37 }
  0xe7   :  { %2201 = vmatmul.msk.f32.gmra.mxu1 %vm252_vm0, %v2153_v7  ;;  %1179 = vperm.xlu2 %2459, %v2643_v6   ;;  %vm531_vm15 = vcmp.eq.s32.totalorder %v493_v39, %v2750_v32  ;;  %v2154_v6 = vsel %vm108_vm2, 1.0, %v2585_v37  ;;  %v1041_v7 = vld [vmem:[#allocation2 + $0xf0] sm:$0xff] }
  0xe8   :  { %v172_v40 = vpop.permute.xlu0 %171  ;;  %v2960_v41 = vpop.permute.xlu2 %736  ;;  %2255 = vmatmul.msk.f32.gmra.mxu3 %vm252_vm0, %v2239_v63  ;;  %v2208_v43 = vsel %vm531_vm15, 1.0, %v2585_v37  ;;  %vm208_vm15 = vcmp.eq.s32.totalorder %v2879_v60, %v2750_v32  ;;  %1569 = vmatpush.msrb.mxu2 %v1507_v3 }
  0xe9   :  { %vm204_vm1 = vcmp.eq.s32.totalorder %v172_v40, %v2750_v32  ;;  %2224 = vmatmul.msk.f32.gmra.mxu2 %vm252_vm0, %v2208_v43  ;;  %1107 = vmatpush.msrb.mxu0 %v1041_v7  ;;  %v1506_v40 = vld [vmem:[#allocation2 + $0x168] sm:$0xff]  ;;  %v1740_v43 = vld [vmem:[#allocation2 + $0x1b0] sm:$0xff] }
  0xea   :  { %v2163_v44 = vsel %vm204_vm1, 1.0, %v2585_v37  ;;  %vm767_vm1 = vcmp.eq.s32.totalorder %v2960_v41, %v2750_v32  ;;  %1570 = vmatpush.msrb.mxu2 %v1506_v40  ;;  %v1040_v41 = vld [vmem:[#allocation2 + $0xe8] sm:$0xff]  ;;  %1800 = vmatpush.msrb.mxu3 %v1740_v43 }
  0xeb   :  { %2179 = vmatmul.msk.f32.gmra.mxu0 %vm252_vm0, %v2163_v44  ;;  %v2244_v60 = vsel %vm767_vm1, 1.0, %v2585_v37 }
  0xec   :  { %1108 = vmatpush.msrb.mxu0 %v1040_v41 }
  0xed   :  { %2460 = vset.pattern.permute.xlu1 %v2587_v34 }
  0xee   :  { %1414 = vperm.xlu1 %2460, %v2620_v2   ;;  %2501 = vset.pattern.permute.xlu0 %v2589_v58 }
  0xef   :  { %2202 = vmatmul.msk.f32.gmra.mxu1 %vm252_vm0, %v2154_v6  ;;  %v728_v42 = vpop.permute.xlu1 %727  ;;  %2461 = vset.pattern.permute.xlu2 %v2588_v49  ;;  %v1276_v6 = vld [vmem:[#allocation2 + $0x140] sm:$0xff] }
  0xf0   :  { %v2985_v46 = vpop.permute.xlu2 %739  ;;  %2256 = vmatmul.msk.f32.gmra.mxu3 %vm252_vm0, %v2240_v45  ;;  %950 = vperm.xlu2 %2461, %v2620_v2   ;;  %vm764_vm7 = vcmp.eq.s32.totalorder %v728_v42, %v2750_v32  ;;  %v181_v22 = vpop.permute.xlu0 %180  ;;  %v1739_v45 = vld [vmem:[#allocation2 + $0x1a8] sm:$0xff] }
  0xf1   :  { %2225 = vmatmul.msk.f32.gmra.mxu2 %vm252_vm0, %v2209_v11  ;;  %v2241_v50 = vsel %vm764_vm7, 1.0, %v2585_v37  ;;  %1676 = vperm.xlu0 %2501, %v2697_v15   ;;  %vm207_vm11 = vcmp.eq.s32.totalorder %v181_v22, %v2750_v32  ;;  %v2211_v15 = vsel %vm534_vm12, 1.0, %v2585_v37  ;;  %vm768_vm5 = vcmp.eq.s32.totalorder %v2985_v46, %v2750_v32  ;;  %v1505_v11 = vld [vmem:[#allocation2 + $0x160] sm:$0xff]  ;;  %v1503_v22 = vld [vmem:[#allocation2 + $0x150] sm:$0xff] }
  0xf2   :  { %v2245_v61 = vsel %vm768_vm5, 1.0, %v2585_v37  ;;  %1336 = vmatpush.msrb.mxu1 %v1276_v6  ;;  %1571 = vmatpush.msrb.mxu2 %v1505_v11  ;;  %vm771_vm12 = vcmp.eq.s32.totalorder %v2939_v19, %v2750_v32  ;;  %v2519_v11 = vld [vmem:[%s3690_s0 + $0x48] sm:$0xff] }
  0xf3   :  { %2180 = vmatmul.msk.f32.gmra.mxu0 %vm252_vm0, %v2164_v47  ;;  %v1275_v47 = vld [vmem:[#allocation2 + $0x138] sm:$0xff]  ;;  %1801 = vmatpush.msrb.mxu3 %v1739_v45 }
  0xf4   :  { %1337 = vmatpush.msrb.mxu1 %v1275_v47 }
  0xf6   :  { %2462 = vset.pattern.permute.xlu1 %v2586_v12 }
  0xf7   :  { %2203 = vmatmul.msk.f32.gmra.mxu1 %vm252_vm0, %v2155_v48  ;;  %1182 = vperm.xlu1 %2462, %v2620_v2   ;;  %v731_v23 = vpop.permute.xlu1 %730  ;;  %v2166_v2 = vsel %vm207_vm11, 1.0, %v2585_v37  ;;  %v1504_v48 = vld [vmem:[#allocation2 + $0x158] sm:$0xff] }
  0xf8   :  { %2257 = vmatmul.msk.f32.gmra.mxu3 %vm252_vm0, %v2241_v50  ;;  %2463 = vset.pattern.permute.xlu2 %v2587_v34  ;;  %vm765_vm10 = vcmp.eq.s32.totalorder %v731_v23, %v2750_v32  ;;  %v1738_v50 = vld [vmem:[#allocation2 + $0x1a0] sm:$0xff] }
  0xf9   :  { %2226 = vmatmul.msk.f32.gmra.mxu2 %vm252_vm0, %v2210_v10  ;;  %1417 = vperm.xlu2 %2463, %v2638_v5   ;;  %v2242_v53 = vsel %vm765_vm10, 1.0, %v2585_v37  ;;  %v1274_v10 = vld [vmem:[#allocation2 + $0x130] sm:$0xff] }
  0xfa   :  { %v3012_v52 = vpop.permute.xlu2 %513  ;;  %2506 = vset.pattern.permute.xlu0 %v2586_v12  ;;  %1572 = vmatpush.msrb.mxu2 %v1504_v48 }
  0xfb   :  { %2181 = vmatmul.msk.f32.gmra.mxu0 %vm252_vm0, %v2165_v51  ;;  %1215 = vperm.xlu0 %2506, %v2692_v14   ;;  %v2167_v14 = vsel %vm208_vm15, 1.0, %v2585_v37  ;;  %v3063_v21 = vpop.f32.mrf.mxu1  ;;  %vm538_vm9 = vcmp.eq.s32.totalorder %v3012_v52, %v2750_v32 }
  0xfc   :  { %v2215_v35 = vsel %vm538_vm9, 1.0, %v2585_v37  ;;  %1802 = vmatpush.msrb.mxu3 %v1738_v50  ;;  %1338 = vmatpush.msrb.mxu1 %v1274_v10 }
  0xfd   :  { %1573 = vmatpush.msrb.mxu2 %v1503_v22 }
  0xff   :  { %2464 = vset.pattern.permute.xlu1 %v2588_v49 }
 0x100   :  { %953 = vperm.xlu1 %2464, %v2638_v5   ;;  %v505_v54 = vpop.permute.xlu1 %504  ;;  %2258 = vmatmul.msk.f32.gmra.mxu3 %vm252_vm0, %v2242_v53  ;;  %v1273_v53 = vld [vmem:[#allocation2 + $0x128] sm:$0xff] }
 0x101   :  { %2227 = vmatmul.msk.f32.gmra.mxu2 %vm252_vm0, %v2211_v15  ;;  %2465 = vset.pattern.permute.xlu2 %v2589_v58  ;;  %vm535_vm14 = vcmp.eq.s32.totalorder %v505_v54, %v2750_v32  ;;  %v2248_v54 = vsel %vm771_vm12, 1.0, %v2585_v37 }
 0x102   :  { %1649 = vperm.xlu2 %2465, %v2638_v5   ;;  %v3033_v18 = vpop.permute.xlu2 %516  ;;  %v2212_v5 = vsel %vm535_vm14, 1.0, %v2585_v37  ;;  %1339 = vmatpush.msrb.mxu1 %v1273_v53 }
 0x103   :  { %2182 = vmatmul.msk.f32.gmra.mxu0 %vm252_vm0, %v2166_v2  ;;  %2511 = vset.pattern.permute.xlu0 %v2587_v34  ;;  %v3085_v27 = vpop.f32.mrf.mxu1  ;;  %vm539_vm11 = vcmp.eq.s32.totalorder %v3033_v18, %v2750_v32  ;;  %v1737_v2 = vld [vmem:[#allocation2 + $0x198] sm:$0xff]  ;;  %v1736_v18 = vld [vmem:[#allocation2 + $0x190] sm:$0xff] }
 0x104   :  { %1453 = vperm.xlu0 %2511, %v2705_v16   ;;  %v2216_v23 = vsel %vm539_vm11, 1.0, %v2585_v37  ;;  %1803 = vmatpush.msrb.mxu3 %v1737_v2 }
 0x106   :  { %1804 = vmatpush.msrb.mxu3 %v1736_v18 }
 0x108   :  { %2468 = vset.pattern.permute.xlu1 %v2587_v34  ;;  %v508_v55 = vpop.permute.xlu1 %507  ;;  %2259 = vmatmul.msk.f32.gmra.mxu3 %vm252_vm0, %v2243_v29  ;;  %v1272_v29 = vld [vmem:[#allocation2 + $0x120] sm:$0xff] }
 0x109   :  { %1420 = vperm.xlu1 %2468, %v2615_v1   ;;  %2228 = vmatmul.msk.f32.gmra.mxu2 %vm252_vm0, %v2212_v5  ;;  %vm536_vm2 = vcmp.eq.s32.totalorder %v508_v55, %v2750_v32 }
 0x10a   :  { %2469 = vset.pattern.permute.xlu2 %v2588_v49  ;;  %v2213_v59 = vsel %vm536_vm2, 1.0, %v2585_v37  ;;  %1340 = vmatpush.msrb.mxu1 %v1272_v29 }
 0x10b   :  { %2183 = vmatmul.msk.f32.gmra.mxu0 %vm252_vm0, %v2167_v14  ;;  %956 = vperm.xlu2 %2469, %v2615_v1   ;;  %v1735_v14 = vld [vmem:[#allocation2 + $0x188] sm:$0xff] }
 0x10c   :  { %v190_v57 = vpop.permute.xlu2 %189  ;;  %2515 = vset.pattern.permute.xlu0 %v2589_v58  ;;  %v3111_v42 = vpop.f32.mrf.mxu1  ;;  %1805 = vmatpush.msrb.mxu3 %v1735_v14 }
 0x10d   :  { %vm210_vm6 = vcmp.eq.s32.totalorder %v190_v57, %v2750_v32  ;;  %v1271_v57 = vld [vmem:[#allocation2 + $0x118] sm:$0xff] }
 0x10e   :  { %v2169_v24 = vsel %vm210_vm6, 1.0, %v2585_v37  ;;  %1341 = vmatpush.msrb.mxu1 %v1271_v57 }
 0x110   :  { %2260 = vmatmul.msk.f32.gmra.mxu3 %vm252_vm0, %v2244_v60 }
 0x111   :  { %2470 = vset.pattern.permute.xlu1 %v2589_v58  ;;  %v743_v62 = vpop.permute.xlu1 %742  ;;  %2229 = vmatmul.msk.f32.gmra.mxu2 %vm252_vm0, %v2213_v59 }
 0x112   :  { %1652 = vperm.xlu1 %2470, %v2615_v1   ;;  %vm769_vm7 = vcmp.eq.s32.totalorder %v743_v62, %v2750_v32 }
 0x113   :  { %2184 = vmatmul.msk.f32.gmra.mxu0 %vm252_vm0, %v2168_v13  ;;  %2471 = vset.pattern.permute.xlu2 %v2586_v12  ;;  %v2246_v31 = vsel %vm769_vm7, 1.0, %v2585_v37 }
 0x114   :  { %1188 = vperm.xlu2 %2471, %v2615_v1   ;;  %v193_v1 = vpop.permute.xlu0 %192  ;;  %v3137_v55 = vpop.f32.mrf.mxu1 }
 0x115   :  { %v3074_v16 = vpop.permute.xlu2 %522  ;;  %vm211_vm8 = vcmp.eq.s32.totalorder %v193_v1, %v2750_v32  ;;  %v2518_v1 = vld [vmem:[%s3690_s0 + $0x40] sm:$0xff] }
 0x116   :  { %v2170_v8 = vsel %vm211_vm8, 1.0, %v2585_v37  ;;  %vm541_vm15 = vcmp.eq.s32.totalorder %v3074_v16, %v2750_v32 }
 0x117   :  { %v2218_v20 = vsel %vm541_vm15, 1.0, %v2585_v37 }
 0x118   :  { %2261 = vmatmul.msk.f32.gmra.mxu3 %vm252_vm0, %v2245_v61 }
 0x119   :  { %v746_v26 = vpop.permute.xlu1 %745  ;;  %2230 = vmatmul.msk.f32.gmra.mxu2 %vm252_vm0, %v2214_v56 }
 0x11a   :  { %2473 = vset.pattern.permute.xlu1 %v2588_v49  ;;  %vm770_vm10 = vcmp.eq.s32.totalorder %v746_v26, %v2750_v32 }
 0x11b   :  { %2185 = vmatmul.msk.f32.gmra.mxu0 %vm252_vm0, %v2169_v24  ;;  %959 = vperm.xlu1 %2473, %v2633_v4   ;;  %v2247_v46 = vsel %vm770_vm10, 1.0, %v2585_v37 }
 0x11c   :  { %2474 = vset.pattern.permute.xlu2 %v2589_v58  ;;  %v3125_v51 = vpop.permute.xlu0 %1185  ;;  %v3156_v16 = vpop.f32.mrf.mxu1 }
 0x11d   :  { %v3090_v33 = vpop.permute.xlu2 %525  ;;  %1655 = vperm.xlu2 %2474, %v2633_v4  }
 0x11e   :  { %vm542_vm2 = vcmp.eq.s32.totalorder %v3090_v33, %v2750_v32 }
 0x11f   :  { %v2219_v24 = vsel %vm542_vm2, 1.0, %v2585_v37 }
 0x120   :  { %2262 = vmatmul.msk.f32.gmra.mxu3 %vm252_vm0, %v2246_v31 }
 0x121   :  { %2231 = vmatmul.msk.f32.gmra.mxu2 %vm252_vm0, %v2215_v35 }
 0x122   :  { %v520_v39 = vpop.permute.xlu1 %519 }
 0x123   :  { %2186 = vmatmul.msk.f32.gmra.mxu0 %vm252_vm0, %v2170_v8  ;;  %2475 = vset.pattern.permute.xlu1 %v2586_v12  ;;  %vm540_vm13 = vcmp.eq.s32.totalorder %v520_v39, %v2750_v32 }
 0x124   :  { %1191 = vperm.xlu1 %2475, %v2633_v4   ;;  %v1039_v4 = vld [vmem:[#allocation2 + $0xe0] sm:$0xff]  ;;  %v2217_v5 = vsel %vm540_vm13, 1.0, %v2585_v37  ;;  %v1409_v59 = vpop.permute.xlu0 %1408  ;;  %v3178_v30 = vpop.f32.mrf.mxu1 }
 0x125   :  { %v3104_v63 = vpop.f32.mrf.mxu0  ;;  %2476 = vset.pattern.permute.xlu2 %v2587_v34  ;;  %1109 = vmatpush.msrb.mxu0 %v1039_v4  ;;  %vm1455_vm4 = vcmp.eq.s32.totalorder %v1409_v59, %v2750_v32 }
 0x126   :  { %v3109_v44 = vpop.permute.xlu2 %757  ;;  %1426 = vperm.xlu2 %2476, %v2661_v9   ;;  %v2332_v31 = vsel %vm1455_vm4, 1.0, %v2585_v37  ;;  %vm1226_vm4 = vcmp.eq.s32.totalorder %v3125_v51, %v2750_v32 }
 0x127   :  { %vm774_vm5 = vcmp.eq.s32.totalorder %v3109_v44, %v2750_v32 }
 0x128   :  { %2263 = vmatmul.msk.f32.gmra.mxu3 %vm252_vm0, %v2247_v46  ;;  %v2251_v8 = vsel %vm774_vm5, 1.0, %v2585_v37 }
 0x129   :  { %2232 = vmatmul.msk.f32.gmra.mxu2 %vm252_vm0, %v2216_v23 }
 0x12b   :  { %v752_v52 = vpop.permute.xlu1 %751 }
 0x12c   :  { %2478 = vset.pattern.permute.xlu1 %v2589_v58  ;;  %vm772_vm14 = vcmp.eq.s32.totalorder %v752_v52, %v2750_v32  ;;  %v3164_v56 = vpop.permute.xlu0 %1423  ;;  %v3199_v39 = vpop.f32.mrf.mxu1 }
 0x12d   :  { %v3130_v15 = vpop.f32.mrf.mxu0  ;;  %1658 = vperm.xlu1 %2478, %v2661_v9   ;;  %v2249_v62 = vsel %vm772_vm14, 1.0, %v2585_v37 }
 0x12e   :  { %2479 = vset.pattern.permute.xlu2 %v2586_v12 }
 0x12f   :  { %v3134_v19 = vpop.permute.xlu2 %1640  ;;  %1194 = vperm.xlu2 %2479, %v2661_v9   ;;  %v2517_v9 = vld [vmem:[%s3690_s0 + $0x38] sm:$0xff] }
 0x130   :  { %2264 = vmatmul.msk.f32.gmra.mxu3 %vm252_vm0, %v2248_v54  ;;  %vm1687_vm8 = vcmp.eq.s32.totalorder %v3134_v19, %v2750_v32 }
 0x131   :  { %2233 = vmatmul.msk.f32.gmra.mxu2 %vm252_vm0, %v2217_v5  ;;  %v2364_v43 = vsel %vm1687_vm8, 1.0, %v2585_v37 }
 0x133   :  { %v755_v60 = vpop.permute.xlu1 %754 }
 0x134   :  { %vm773_vm1 = vcmp.eq.s32.totalorder %v755_v60, %v2750_v32  ;;  %v948_v36 = vpop.permute.xlu0 %947  ;;  %v3227_v22 = vpop.f32.mrf.mxu1  ;;  %v2520_v60 = vld [vmem:[%s3690_s0 + $0x50] sm:$0xff] }
 0x135   :  { %2480 = vset.pattern.permute.xlu1 %v2587_v34  ;;  %v3150_v13 = vpop.f32.mrf.mxu0  ;;  %v2250_v61 = vsel %vm773_vm1, 1.0, %v2585_v37  ;;  %vm992_vm7 = vcmp.eq.s32.totalorder %v948_v36, %v2750_v32 }
 0x136   :  { %1429 = vperm.xlu1 %2480, %v2517_v9   ;;  %v2269_v40 = vsel %vm992_vm7, 1.0, %v2585_v37 }
 0x137   :  { %2481 = vset.pattern.permute.xlu2 %v2588_v49 }
 0x138   :  { %2265 = vmatmul.msk.f32.gmra.mxu3 %vm252_vm0, %v2249_v62  ;;  %965 = vperm.xlu2 %2481, %v2517_v9   ;;  %v1412_v38 = vpop.permute.xlu2 %1411 }
 0x139   :  { %2234 = vmatmul.msk.f32.gmra.mxu2 %vm252_vm0, %v2218_v20  ;;  %vm1456_vm9 = vcmp.eq.s32.totalorder %v1412_v38, %v2750_v32 }
 0x13a   :  { %v2333_v44 = vsel %vm1456_vm9, 1.0, %v2585_v37  ;;  %vm1460_vm9 = vcmp.eq.s32.totalorder %v3164_v56, %v2750_v32 }
 0x13c   :  { %v196_v17 = vpop.permute.xlu1 %195  ;;  %v3187_v35 = vpop.f32.mrf.mxu2 }
 0x13d   :  { %vm212_vm3 = vcmp.eq.s32.totalorder %v196_v17, %v2750_v32  ;;  %v3171_v26 = vpop.f32.mrf.mxu0  ;;  %v3212_v4 = vpop.permute.xlu0 %962 }
 0x13e   :  { %v2171_v25 = vsel %vm212_vm3, 1.0, %v2585_v37  ;;  %2482 = vset.pattern.permute.xlu1 %v2586_v12  ;;  %v3245_v14 = vpop.f32.mrf.mxu1 }
 0x13f   :  { %1197 = vperm.xlu1 %2482, %v2517_v9   ;;  %2187 = vmatmul.msk.f32.gmra.mxu0 %vm252_vm0, %v2171_v25 }
 0x140   :  { %2266 = vmatmul.msk.f32.gmra.mxu3 %vm252_vm0, %v2250_v61  ;;  %2483 = vset.pattern.permute.xlu2 %v2587_v34 }
 0x141   :  { %2235 = vmatmul.msk.f32.gmra.mxu2 %vm252_vm0, %v2219_v24  ;;  %1432 = vperm.xlu2 %2483, %v2518_v1   ;;  %v1180_v33 = vpop.permute.xlu2 %1179 }
 0x142   :  { %vm1224_vm12 = vcmp.eq.s32.totalorder %v1180_v33, %v2750_v32 }
 0x143   :  { %v2301_v50 = vsel %vm1224_vm12, 1.0, %v2585_v37 }
 0x144   :  { %v3214_v45 = vpop.f32.mrf.mxu2 }
 0x145   :  { %v945_v0 = vpop.permute.xlu1 %944  ;;  %v3193_v3 = vpop.f32.mrf.mxu0 }
 0x146   :  { %vm991_vm6 = vcmp.eq.s32.totalorder %v945_v0, %v2750_v32  ;;  %v1647_v53 = vpop.permute.xlu0 %1646 }
 0x147   :  { %v2268_v28 = vsel %vm991_vm6, 1.0, %v2585_v37  ;;  %2484 = vset.pattern.permute.xlu1 %v2588_v49  ;;  %vm1689_vm14 = vcmp.eq.s32.totalorder %v1647_v53, %v2750_v32  ;;  %v2522_v53 = vld [vmem:[%s3690_s0 + $0x60] sm:$0xff] }
 0x148   :  { %968 = vperm.xlu1 %2484, %v2518_v1   ;;  %2267 = vmatmul.msk.f32.gmra.mxu3 %vm252_vm0, %v2251_v8  ;;  %v2366_v5 = vsel %vm1689_vm14, 1.0, %v2585_v37  ;;  %v2521_v8 = vld [vmem:[%s3690_s0 + $0x58] sm:$0xff]  ;;  %vm997_vm14 = vcmp.eq.s32.totalorder %v3212_v4, %v2750_v32 }
 0x149   :  { %2284 = vmatmul.msk.f32.vlgmr.msrb.gmra.mxu0 %vm252_vm0, %v2268_v28  ;;  %2348 = vmatmul.msk.f32.vlgmr.msrb.gmra.mxu2 %vm252_vm0, %v2332_v31  ;;  %v2303_v28 = vsel %vm1226_vm4, 1.0, %v2585_v37 }
 0x14a   :  { %2485 = vset.pattern.permute.xlu2 %v2589_v58  ;;  %v951_v7 = vpop.permute.xlu2 %950 }
 0x14b   :  { %1664 = vperm.xlu2 %2485, %v2518_v1   ;;  %vm993_vm11 = vcmp.eq.s32.totalorder %v951_v7, %v2750_v32  ;;  %v458_v1 = vpop.f32.mrf.mxu1 }
 0x14c   :  { %v2270_v23 = vsel %vm993_vm11, 1.0, %v2585_v37  ;;  %v3237_v54 = vpop.f32.mrf.mxu2 }
 0x14d   :  { %v3223_v48 = vpop.f32.mrf.mxu0 }
 0x14e   :  { %v1177_v41 = vpop.permute.xlu1 %1176 }
 0x14f   :  { %vm1223_vm10 = vcmp.eq.s32.totalorder %v1177_v41, %v2750_v32 }
 0x150   :  { %v2300_v6 = vsel %vm1223_vm10, 1.0, %v2585_v37  ;;  %2487 = vset.pattern.permute.xlu1 %v2587_v34  ;;  %2380 = vmatmul.msk.f32.vlgmr.msrb.gmra.mxu3 %vm252_vm0, %v2364_v43 }
 0x151   :  { %2285 = vmatmul.msk.f32.gmra.mxu0 %vm252_vm0, %v2269_v40  ;;  %1435 = vperm.xlu1 %2487, %v2519_v11  }
 0x152   :  { %2316 = vmatmul.msk.f32.vlgmr.msrb.gmra.mxu1 %vm252_vm0, %v2300_v6  ;;  %2349 = vmatmul.msk.f32.gmra.mxu2 %vm252_vm0, %v2333_v44 }
 0x153   :  { %v3218_v46 = vpop.f32.mrf.mxu3  ;;  %2488 = vset.pattern.permute.xlu2 %v2588_v49  ;;  %v1418_v47 = vpop.permute.xlu2 %1417 }
 0x154   :  { %971 = vperm.xlu2 %2488, %v2519_v11   ;;  %vm1458_vm1 = vcmp.eq.s32.totalorder %v1418_v47, %v2750_v32  ;;  %v461_v41 = vpop.f32.mrf.mxu1 }
 0x155   :  { %v3241_v18 = vpop.f32.mrf.mxu0  ;;  %v2335_v38 = vsel %vm1458_vm1, 1.0, %v2585_v37 }
 0x157   :  { %v1644_v10 = vpop.permute.xlu1 %1643 }
 0x158   :  { %vm1688_vm13 = vcmp.eq.s32.totalorder %v1644_v10, %v2750_v32 }
 0x159   :  { %v2365_v52 = vsel %vm1688_vm13, 1.0, %v2585_v37  ;;  %2286 = vmatmul.msk.f32.gmra.mxu0 %vm252_vm0, %v2270_v23  ;;  %2489 = vset.pattern.permute.xlu1 %v2589_v58 }
 0x15a   :  { %2317 = vmatmul.msk.f32.gmra.mxu1 %vm252_vm0, %v2301_v50  ;;  %1667 = vperm.xlu1 %2489, %v2519_v11  }
 0x15b   :  { %2381 = vmatmul.msk.f32.gmra.mxu3 %vm252_vm0, %v2365_v52  ;;  %v3235_v2 = vpop.f32.mrf.mxu3 }
 0x15c   :  { %2490 = vset.pattern.permute.xlu2 %v2586_v12  ;;  %v1650_v19 = vpop.permute.xlu2 %1649 }
 0x15d   :  { %1203 = vperm.xlu2 %2490, %v2519_v11   ;;  %vm1690_vm2 = vcmp.eq.s32.totalorder %v1650_v19, %v2750_v32 }
 0x15e   :  { %v2367_v25 = vsel %vm1690_vm2, 1.0, %v2585_v37 }
 0x160   :  { %v1415_v29 = vpop.permute.xlu1 %1414 }
 0x161   :  { %vm1457_vm15 = vcmp.eq.s32.totalorder %v1415_v29, %v2750_v32  ;;  %v464_v29 = vpop.f32.mrf.mxu1 }
 0x162   :  { %v2334_v57 = vsel %vm1457_vm15, 1.0, %v2585_v37  ;;  %2492 = vset.pattern.permute.xlu1 %v2588_v49 }
 0x163   :  { %974 = vperm.xlu1 %2492, %v2520_v60   ;;  %v3252_v59 = vpop.f32.mrf.mxu3  ;;  %2350 = vmatmul.msk.f32.gmra.mxu2 %vm252_vm0, %v2334_v57 }
 0x164   :  { %v3255_v9 = vpop.f32.mrf.mxu2  ;;  %2382 = vmatmul.msk.f32.gmra.mxu3 %vm252_vm0, %v2366_v5 }
 0x165   :  { %2493 = vset.pattern.permute.xlu2 %v2589_v58  ;;  %v957_v62 = vpop.permute.xlu2 %956 }
 0x166   :  { %1670 = vperm.xlu2 %2493, %v2520_v60   ;;  %vm995_vm7 = vcmp.eq.s32.totalorder %v957_v62, %v2750_v32 }
 0x167   :  { %v2272_v47 = vsel %vm995_vm7, 1.0, %v2585_v37 }
 0x168   :  { %v3260_v20 = vpop.f32.mrf.mxu0 }
 0x169   :  { %v1183_v17 = vpop.permute.xlu1 %1182 }
 0x16a   :  { %vm1225_vm3 = vcmp.eq.s32.totalorder %v1183_v17, %v2750_v32 }
 0x16b   :  { %v2302_v61 = vsel %vm1225_vm3, 1.0, %v2585_v37  ;;  %2494 = vset.pattern.permute.xlu1 %v2586_v12  ;;  %v3268_v24 = vpop.f32.mrf.mxu3  ;;  %2351 = vmatmul.msk.f32.gmra.mxu2 %vm252_vm0, %v2335_v38 }
 0x16c   :  { %1206 = vperm.xlu1 %2494, %v2520_v60   ;;  %v3271_v33 = vpop.f32.mrf.mxu2  ;;  %2318 = vmatmul.msk.f32.gmra.mxu1 %vm252_vm0, %v2302_v61  ;;  %v2337_v60 = vsel %vm1460_vm9, 1.0, %v2585_v37 }
 0x16d   :  { %2383 = vmatmul.msk.f32.gmra.mxu3 %vm252_vm0, %v2367_v25 }
 0x16e   :  { %2495 = vset.pattern.permute.xlu2 %v2587_v34  ;;  %v1189_v0 = vpop.permute.xlu2 %1188 }
 0x16f   :  { %1441 = vperm.xlu2 %2495, %v2521_v8   ;;  %vm1227_vm6 = vcmp.eq.s32.totalorder %v1189_v0, %v2750_v32  ;;  %v467_v0 = vpop.f32.mrf.mxu1 }
 0x170   :  { %v342_v31 = vpop.f32.mrf.mxu0  ;;  %v2304_v11 = vsel %vm1227_vm6, 1.0, %v2585_v37 }
 0x172   :  { %v954_v36 = vpop.permute.xlu1 %953 }
 0x173   :  { %vm994_vm5 = vcmp.eq.s32.totalorder %v954_v36, %v2750_v32  ;;  %v3283_v7 = vpop.f32.mrf.mxu3 }
 0x174   :  { %v2271_v40 = vsel %vm994_vm5, 1.0, %v2585_v37  ;;  %2497 = vset.pattern.permute.xlu1 %v2589_v58  ;;  %v3287_v51 = vpop.f32.mrf.mxu2  ;;  %2319 = vmatmul.msk.f32.gmra.mxu1 %vm252_vm0, %v2303_v28  ;;  %v456_v28 = vadd.f32 %v3245_v14, %v342_v31 }
 0x175   :  { %1673 = vperm.xlu1 %2497, %v2521_v8   ;;  %2287 = vmatmul.msk.f32.gmra.mxu0 %vm252_vm0, %v2271_v40 }
 0x177   :  { %2498 = vset.pattern.permute.xlu2 %v2586_v12  ;;  %v1656_v44 = vpop.permute.xlu2 %1655 }
 0x178   :  { %v345_v43 = vpop.f32.mrf.mxu0  ;;  %1209 = vperm.xlu2 %2498, %v2521_v8   ;;  %vm1692_vm12 = vcmp.eq.s32.totalorder %v1656_v44, %v2750_v32  ;;  %v2523_v8 = vld [vmem:[%s3690_s0 + $0x68] sm:$0xff] }
 0x179   :  { %v3294_v6 = vadd.f32 %v458_v1, %v345_v43 }
 0x17b   :  { %v1421_v23 = vpop.permute.xlu1 %1420  ;;  %v3298_v50 = vpop.f32.mrf.mxu3 }
 0x17c   :  { %vm1459_vm8 = vcmp.eq.s32.totalorder %v1421_v23, %v2750_v32  ;;  %v3301_v10 = vpop.f32.mrf.mxu2  ;;  %2320 = vmatmul.msk.f32.gmra.mxu1 %vm252_vm0, %v2304_v11 }
 0x17d   :  { %v2336_v52 = vsel %vm1459_vm8, 1.0, %v2585_v37  ;;  %2499 = vset.pattern.permute.xlu1 %v2587_v34  ;;  %2288 = vmatmul.msk.f32.gmra.mxu0 %vm252_vm0, %v2272_v47 }
 0x17e   :  { %1444 = vperm.xlu1 %2499, %v2522_v53   ;;  %2352 = vmatmul.msk.f32.gmra.mxu2 %vm252_vm0, %v2336_v52 }
 0x180   :  { %v348_v19 = vpop.f32.mrf.mxu0  ;;  %2500 = vset.pattern.permute.xlu2 %v2588_v49  ;;  %v1427_v57 = vpop.permute.xlu2 %1426 }
 0x181   :  { %v3313_v5 = vadd.f32 %v461_v41, %v348_v19  ;;  %980 = vperm.xlu2 %2500, %v2522_v53   ;;  %vm1461_vm11 = vcmp.eq.s32.totalorder %v1427_v57, %v2750_v32  ;;  %v2369_v41 = vsel %vm1692_vm12, 1.0, %v2585_v37  ;;  %v2274_v57 = vsel %vm997_vm14, 1.0, %v2585_v37 }
 0x182   :  { %v2338_v40 = vsel %vm1461_vm11, 1.0, %v2585_v37 }
 0x183   :  { %v3317_v62 = vpop.f32.mrf.mxu3 }
 0x184   :  { %v1653_v38 = vpop.permute.xlu1 %1652  ;;  %v3319_v17 = vpop.f32.mrf.mxu2 }
 0x185   :  { %vm1691_vm10 = vcmp.eq.s32.totalorder %v1653_v38, %v2750_v32 }
 0x186   :  { %v2368_v25 = vsel %vm1691_vm10, 1.0, %v2585_v37  ;;  %2502 = vset.pattern.permute.xlu1 %v2586_v12  ;;  %2353 = vmatmul.msk.f32.gmra.mxu2 %vm252_vm0, %v2337_v60 }
 0x187   :  { %1212 = vperm.xlu1 %2502, %v2522_v53   ;;  %2384 = vmatmul.msk.f32.gmra.mxu3 %vm252_vm0, %v2368_v25  ;;  %v470_v53 = vpop.f32.mrf.mxu1 }
 0x188   :  { %v351_v56 = vpop.f32.mrf.mxu0 }
 0x189   :  { %v3326_v61 = vadd.f32 %v464_v29, %v351_v56  ;;  %v1195_v1 = vpop.permute.xlu2 %1194  ;;  %2503 = vset.pattern.permute.xlu2 %v2587_v34 }
 0x18a   :  { %1447 = vperm.xlu2 %2503, %v2523_v8   ;;  %vm1229_vm2 = vcmp.eq.s32.totalorder %v1195_v1, %v2750_v32 }
 0x18b   :  { %v3335_v36 = vpop.f32.mrf.mxu3 }
 0x18c   :  { %v671_v43 = vpop.f32.mrf.mxu2 }
 0x18d   :  { %v703_v11 = vadd.f32 %v671_v43, %v456_v28  ;;  %v960_v44 = vpop.permute.xlu1 %959 }
 0x18e   :  { %vm996_vm13 = vcmp.eq.s32.totalorder %v960_v44, %v2750_v32  ;;  %2354 = vmatmul.msk.f32.gmra.mxu2 %vm252_vm0, %v2338_v40 }
 0x18f   :  { %v2273_v47 = vsel %vm996_vm13, 1.0, %v2585_v37  ;;  %2504 = vset.pattern.permute.xlu1 %v2588_v49  ;;  %2385 = vmatmul.msk.f32.gmra.mxu3 %vm252_vm0, %v2369_v41  ;;  %v473_v43 = vpop.f32.mrf.mxu1 }
 0x190   :  { %v354_v23 = vpop.f32.mrf.mxu0  ;;  %983 = vperm.xlu1 %2504, %v2523_v8   ;;  %2289 = vmatmul.msk.f32.gmra.mxu0 %vm252_vm0, %v2273_v47 }
 0x191   :  { %v3344_v14 = vadd.f32 %v467_v0, %v354_v23  ;;  %v2524_v0 = vld [vmem:[%s3690_s0 + $0x70] sm:$0xff] }
 0x192   :  { %2505 = vset.pattern.permute.xlu2 %v2589_v58  ;;  %v966_v52 = vpop.permute.xlu2 %965 }
 0x193   :  { %v903_v31 = vpop.f32.mrf.mxu3  ;;  %1679 = vperm.xlu2 %2505, %v2523_v8   ;;  %vm998_vm1 = vcmp.eq.s32.totalorder %v966_v52, %v2750_v32 }
 0x194   :  { %v3350_v19 = vadd.f32 %v903_v31, %v703_v11  ;;  %v674_v29 = vpop.f32.mrf.mxu2  ;;  %v2275_v41 = vsel %vm998_vm1, 1.0, %v2585_v37  ;;  %v2306_v11 = vsel %vm1229_vm2, 1.0, %v2585_v37  ;;  %v1662_v31 = vpop.permute.xlu0 %1661 }
 0x195   :  { %v704_v60 = vadd.f32 %v674_v29, %v3294_v6  ;;  %vm1694_vm4 = vcmp.eq.s32.totalorder %v1662_v31, %v2750_v32 }
 0x196   :  { %v1192_v38 = vpop.permute.xlu1 %1191 }
 0x197   :  { %vm1228_vm15 = vcmp.eq.s32.totalorder %v1192_v38, %v2750_v32 }
 0x198   :  { %v357_v25 = vpop.f32.mrf.mxu0  ;;  %v2305_v56 = vsel %vm1228_vm15, 1.0, %v2585_v37  ;;  %2507 = vset.pattern.permute.xlu1 %v2587_v34  ;;  %2290 = vmatmul.msk.f32.gmra.mxu0 %vm252_vm0, %v2274_v57 }
 0x199   :  { %v3356_v4 = vadd.f32 %v470_v53, %v357_v25  ;;  %1450 = vperm.xlu1 %2507, %v2524_v0   ;;  %2321 = vmatmul.msk.f32.gmra.mxu1 %vm252_vm0, %v2305_v56  ;;  %v2525_v56 = vld [vmem:[%s3690_s0 + $0x78] sm:$0xff]  ;;  %s2590_s0 = smov 64  }
 0x19b   :  { %v906_v6 = vpop.f32.mrf.mxu3  ;;  %2508 = vset.pattern.permute.xlu2 %v2588_v49  ;;  %v1433_v8 = vpop.permute.xlu2 %1432 }
 0x19c   :  { %v3367_v28 = vadd.f32 %v906_v6, %v704_v60  ;;  %v677_v34 = vpop.f32.mrf.mxu2  ;;  %986 = vperm.xlu2 %2508, %v2524_v0   ;;  %v2371_v60 = vsel %vm1694_vm4, 1.0, %v2585_v37  ;;  %vm1463_vm7 = vcmp.eq.s32.totalorder %v1433_v8, %v2750_v32 }
 0x19d   :  { %v705_v40 = vadd.f32 %v677_v34, %v3313_v5 }
 0x19f   :  { %v1659_v44 = vpop.permute.xlu1 %1658 }
 0x1a0   :  { %v360_v47 = vpop.f32.mrf.mxu0  ;;  %vm1693_vm3 = vcmp.eq.s32.totalorder %v1659_v44, %v2750_v32  ;;  %2291 = vmatmul.msk.f32.gmra.mxu0 %vm252_vm0, %v2275_v41  ;;  %v2340_v41 = vsel %vm1463_vm7, 1.0, %v2585_v37 }
 0x1a1   :  { %v474_v1 = vadd.f32 %v473_v43, %v360_v47  ;;  %v2370_v23 = vsel %vm1693_vm3, 1.0, %v2585_v37  ;;  %2509 = vset.pattern.permute.xlu1 %v2589_v58  ;;  %2322 = vmatmul.msk.f32.gmra.mxu1 %vm252_vm0, %v2306_v11 }
 0x1a2   :  { %1682 = vperm.xlu1 %2509, %v2524_v0   ;;  %2386 = vmatmul.msk.f32.gmra.mxu3 %vm252_vm0, %v2370_v23 }
 0x1a3   :  { %v909_v5 = vpop.f32.mrf.mxu3 }
 0x1a4   :  { %v3378_v52 = vadd.f32 %v909_v5, %v705_v40  ;;  %v680_v53 = vpop.f32.mrf.mxu2  ;;  %2510 = vset.pattern.permute.xlu2 %v2586_v12 }
 0x1a5   :  { %v706_v29 = vadd.f32 %v680_v53, %v3326_v61  ;;  %1218 = vperm.xlu2 %2510, %v2524_v0   ;;  %v1665_v57 = vpop.permute.xlu2 %1664  ;;  %v476_v53 = vpop.f32.mrf.mxu1 }
 0x1a6   :  { %vm1695_vm6 = vcmp.eq.s32.totalorder %v1665_v57, %v2750_v32 }
 0x1a7   :  { %v2372_v40 = vsel %vm1695_vm6, 1.0, %v2585_v37 }
 0x1a8   :  { %v1430_v38 = vpop.permute.xlu1 %1429 }
 0x1a9   :  { %vm1462_vm5 = vcmp.eq.s32.totalorder %v1430_v38, %v2750_v32 }
 0x1aa   :  { %v2339_v25 = vsel %vm1462_vm5, 1.0, %v2585_v37  ;;  %2512 = vset.pattern.permute.xlu1 %v2588_v49  ;;  %2387 = vmatmul.msk.f32.gmra.mxu3 %vm252_vm0, %v2371_v60 }
 0x1ab   :  { %989 = vperm.xlu1 %2512, %v2525_v56   ;;  %v912_v6 = vpop.f32.mrf.mxu3  ;;  %2355 = vmatmul.msk.f32.gmra.mxu2 %vm252_vm0, %v2339_v25 }
 0x1ac   :  { %v3392_v61 = vadd.f32 %v912_v6, %v706_v29  ;;  %v683_v0 = vpop.f32.mrf.mxu2 }
 0x1ad   :  { %v707_v34 = vadd.f32 %v683_v0, %v3344_v14  ;;  %2513 = vset.pattern.permute.xlu2 %v2589_v58  ;;  %v1201_v14 = vpop.permute.xlu0 %1200 }
 0x1ae   :  { %v972_v49 = vpop.permute.xlu2 %971  ;;  %1685 = vperm.xlu2 %2513, %v2525_v56   ;;  %vm1231_vm9 = vcmp.eq.s32.totalorder %v1201_v14, %v2750_v32 }
 0x1af   :  { %v2308_v31 = vsel %vm1231_vm9, 1.0, %v2585_v37  ;;  %vm1000_vm12 = vcmp.eq.s32.totalorder %v972_v49, %v2750_v32 }
 0x1b0   :  { %v2277_v0 = vsel %vm1000_vm12, 1.0, %v2585_v37 }
 0x1b1   :  { %v1198_v43 = vpop.permute.xlu1 %1197 }
 0x1b2   :  { %vm1230_vm8 = vcmp.eq.s32.totalorder %v1198_v43, %v2750_v32  ;;  %2388 = vmatmul.msk.f32.gmra.mxu3 %vm252_vm0, %v2372_v40 }
 0x1b3   :  { %v2307_v11 = vsel %vm1230_vm8, 1.0, %v2585_v37  ;;  %2514 = vset.pattern.permute.xlu1 %v2586_v12  ;;  %v915_v8 = vpop.f32.mrf.mxu3  ;;  %2356 = vmatmul.msk.f32.gmra.mxu2 %vm252_vm0, %v2340_v41 }
 0x1b4   :  { %v3405_v58 = vadd.f32 %v915_v8, %v707_v34  ;;  %1221 = vperm.xlu1 %2514, %v2525_v56   ;;  %v686_v44 = vpop.f32.mrf.mxu2  ;;  %2323 = vmatmul.msk.f32.gmra.mxu1 %vm252_vm0, %v2307_v11  ;;  %v432_v8 = vadd.f32 %v3063_v21, %v3104_v63 }
 0x1b5   :  { %v708_v47 = vadd.f32 %v686_v44, %v3356_v4  ;;  %v1439_v49 = vpop.permute.xlu0 %1438 }
 0x1b6   :  { %vm1465_vm14 = vcmp.eq.s32.totalorder %v1439_v49, %v2750_v32 }
 0x1b7   :  { %v1204_v23 = vpop.permute.xlu2 %1203 }
 0x1b8   :  { %vm1232_vm11 = vcmp.eq.s32.totalorder %v1204_v23, %v2750_v32 }
 0x1b9   :  { %v2309_v6 = vsel %vm1232_vm11, 1.0, %v2585_v37 }
 0x1ba   :  { %v969_v5 = vpop.permute.xlu1 %968 }
 0x1bb   :  { %vm999_vm10 = vcmp.eq.s32.totalorder %v969_v5, %v2750_v32  ;;  %v918_v12 = vpop.f32.mrf.mxu3 }
 0x1bc   :  { %v2276_v29 = vsel %vm999_vm10, 1.0, %v2585_v37  ;;  %v3413_v57 = vadd.f32 %v918_v12, %v708_v47  ;;  %v363_v60 = vpop.f32.mrf.mxu0  ;;  %v689_v38 = vpop.f32.mrf.mxu2  ;;  %2324 = vmatmul.msk.f32.gmra.mxu1 %vm252_vm0, %v2308_v31  ;;  %v695_v47 = vadd.f32 %v3187_v35, %v432_v8  ;;  %v2342_v31 = vsel %vm1465_vm14, 1.0, %v2585_v37 }
 0x1bd   :  { %v477_v25 = vadd.f32 %v476_v53, %v363_v60  ;;  %v709_v4 = vadd.f32 %v689_v38, %v474_v1  ;;  %2292 = vmatmul.msk.f32.gmra.mxu0 %vm252_vm0, %v2276_v29  ;;  %v435_v35 = vadd.f32 %v3085_v27, %v3130_v15 }
 0x1be   :  { %v927_v5 = vadd.f32 %v3218_v46, %v695_v47 }
 0x1bf   :  { %v696_v46 = vadd.f32 %v3214_v45, %v435_v35 }
 0x1c0   :  { %v1671_v56 = vpop.permute.xlu2 %1670 }
 0x1c1   :  { %vm1697_vm2 = vcmp.eq.s32.totalorder %v1671_v56, %v2750_v32 }
 0x1c3   :  { %v1436_v34 = vpop.permute.xlu1 %1435  ;;  %v921_v40 = vpop.f32.mrf.mxu3 }
 0x1c4   :  { %vm1464_vm13 = vcmp.eq.s32.totalorder %v1436_v34, %v2750_v32  ;;  %v3422_v41 = vadd.f32 %v921_v40, %v709_v4  ;;  %v692_v43 = vpop.f32.mrf.mxu2  ;;  %2325 = vmatmul.msk.f32.gmra.mxu1 %vm252_vm0, %v2309_v6  ;;  %v928_v40 = vadd.f32 %v3235_v2, %v696_v46 }
 0x1c5   :  { %v2341_v1 = vsel %vm1464_vm13, 1.0, %v2585_v37  ;;  %v710_v11 = vadd.f32 %v692_v43, %v477_v25  ;;  %2293 = vmatmul.msk.f32.gmra.mxu0 %vm252_vm0, %v2277_v0  ;;  %v2374_v43 = vsel %vm1697_vm2, 1.0, %v2585_v37 }
 0x1c6   :  { %2357 = vmatmul.msk.f32.gmra.mxu2 %vm252_vm0, %v2341_v1  ;;  %v1111_v14 = vpop.f32.mrf.mxu0 }
 0x1c7   :  { %v1159_v29 = vadd.f32 %v1111_v14, %v927_v5 }
 0x1c9   :  { %v1442_v44 = vpop.permute.xlu2 %1441 }
 0x1ca   :  { %vm1466_vm1 = vcmp.eq.s32.totalorder %v1442_v44, %v2750_v32 }
 0x1cb   :  { %v924_v23 = vpop.f32.mrf.mxu3  ;;  %v2343_v0 = vsel %vm1466_vm1, 1.0, %v2585_v37 }
 0x1cc   :  { %v3434_v53 = vadd.f32 %v924_v23, %v710_v11  ;;  %v1668_v12 = vpop.permute.xlu1 %1667  ;;  %v1575_v63 = vpop.f32.mrf.mxu2 }
 0x1cd   :  { %vm1696_vm15 = vcmp.eq.s32.totalorder %v1668_v12, %v2750_v32  ;;  %v978_v11 = vpop.permute.xlu0 %977  ;;  %v438_v12 = vadd.f32 %v3111_v42, %v3150_v13 }
 0x1ce   :  { %v2373_v60 = vsel %vm1696_vm15, 1.0, %v2585_v37  ;;  %2358 = vmatmul.msk.f32.gmra.mxu2 %vm252_vm0, %v2342_v31  ;;  %v1114_v25 = vpop.f32.mrf.mxu0  ;;  %vm1002_vm4 = vcmp.eq.s32.totalorder %v978_v11, %v2750_v32 }
 0x1cf   :  { %v1343_v21 = vpop.f32.mrf.mxu1  ;;  %2389 = vmatmul.msk.f32.gmra.mxu3 %vm252_vm0, %v2373_v60  ;;  %v1160_v15 = vadd.f32 %v1114_v25, %v928_v40  ;;  %v2279_v14 = vsel %vm1002_vm4, 1.0, %v2585_v37 }
 0x1d0   :  { %v1391_v38 = vadd.f32 %v1343_v21, %v1159_v29  ;;  %v697_v29 = vadd.f32 %v3237_v54, %v438_v12 }
 0x1d2   :  { %v1623_v4 = vadd.f32 %v1575_v63, %v1391_v38  ;;  %v1210_v34 = vpop.permute.xlu2 %1209  ;;  %v929_v35 = vadd.f32 %v3252_v59, %v697_v29 }
 0x1d3   :  { %v1807_v6 = vpop.f32.mrf.mxu3  ;;  %vm1234_vm7 = vcmp.eq.s32.totalorder %v1210_v34, %v2750_v32  ;;  %v441_v34 = vadd.f32 %v3137_v55, %v3171_v26  ;;  %v444_v55 = vadd.f32 %v3156_v16, %v3193_v3 }
 0x1d4   :  { %v3448_v1 = vadd.f32 %v1807_v6, %v1623_v4  ;;  %v2311_v38 = vsel %vm1234_vm7, 1.0, %v2585_v37 }
 0x1d5   :  { %v975_v27 = vpop.permute.xlu1 %974  ;;  %v1578_v2 = vpop.f32.mrf.mxu2 }
 0x1d6   :  { %vm1001_vm3 = vcmp.eq.s32.totalorder %v975_v27, %v2750_v32  ;;  %2359 = vmatmul.msk.f32.gmra.mxu2 %vm252_vm0, %v2343_v0  ;;  %v1117_v60 = vpop.f32.mrf.mxu0  ;;  %v1677_v54 = vpop.permute.xlu0 %1676 }
 0x1d7   :  { %v2278_v45 = vsel %vm1001_vm3, 1.0, %v2585_v37  ;;  %v1346_v56 = vpop.f32.mrf.mxu1  ;;  %2390 = vmatmul.msk.f32.gmra.mxu3 %vm252_vm0, %v2374_v43  ;;  %v1161_v25 = vadd.f32 %v1117_v60, %v929_v35  ;;  %vm1699_vm9 = vcmp.eq.s32.totalorder %v1677_v54, %v2750_v32  ;;  %v698_v43 = vadd.f32 %v3255_v9, %v441_v34 }
 0x1d8   :  { %v1392_v49 = vadd.f32 %v1346_v56, %v1160_v15  ;;  %2294 = vmatmul.msk.f32.gmra.mxu0 %vm252_vm0, %v2278_v45  ;;  %v2376_v27 = vsel %vm1699_vm9, 1.0, %v2585_v37 }
 0x1d9   :  { %v930_v56 = vadd.f32 %v3268_v24, %v698_v43 }
 0x1da   :  { %v1624_v8 = vadd.f32 %v1578_v2, %v1392_v49 }
 0x1db   :  { %v981_v44 = vpop.permute.xlu2 %980 }
 0x1dc   :  { %vm1003_vm6 = vcmp.eq.s32.totalorder %v981_v44, %v2750_v32 }
 0x1dd   :  { %v2280_v21 = vsel %vm1003_vm6, 1.0, %v2585_v37 }
 0x1de   :  { %v1810_v47 = vpop.f32.mrf.mxu3  ;;  %v1207_v23 = vpop.permute.xlu1 %1206 }
 0x1df   :  { %v3457_v31 = vadd.f32 %v1810_v47, %v1624_v8  ;;  %vm1233_vm5 = vcmp.eq.s32.totalorder %v1207_v23, %v2750_v32 }
 0x1e0   :  { %v2310_v5 = vsel %vm1233_vm5, 1.0, %v2585_v37  ;;  %2295 = vmatmul.msk.f32.gmra.mxu0 %vm252_vm0, %v2279_v14  ;;  %v699_v14 = vadd.f32 %v3271_v33, %v444_v55 }
 0x1e1   :  { %2326 = vmatmul.msk.f32.gmra.mxu1 %vm252_vm0, %v2310_v5 }
 0x1e2   :  { %v931_v5 = vadd.f32 %v3283_v7, %v699_v14 }
 0x1e4   :  { %v1448_v63 = vpop.permute.xlu2 %1447 }
 0x1e5   :  { %vm1468_vm12 = vcmp.eq.s32.totalorder %v1448_v63, %v2750_v32  ;;  %v1216_v63 = vpop.permute.xlu0 %1215 }
 0x1e6   :  { %v1581_v6 = vpop.f32.mrf.mxu2  ;;  %v2345_v23 = vsel %vm1468_vm12, 1.0, %v2585_v37  ;;  %vm1236_vm14 = vcmp.eq.s32.totalorder %v1216_v63, %v2750_v32  ;;  %v453_v63 = vadd.f32 %v3227_v22, %v3260_v20 }
 0x1e7   :  { %v1674_v46 = vpop.permute.xlu1 %1673  ;;  %v1813_v0 = vpop.f32.mrf.mxu3 }
 0x1e8   :  { %vm1698_vm8 = vcmp.eq.s32.totalorder %v1674_v46, %v2750_v32  ;;  %2296 = vmatmul.msk.f32.gmra.mxu0 %vm252_vm0, %v2280_v21 }
 0x1e9   :  { %v2375_v42 = vsel %vm1698_vm8, 1.0, %v2585_v37  ;;  %v1349_v13 = vpop.f32.mrf.mxu1  ;;  %2327 = vmatmul.msk.f32.gmra.mxu1 %vm252_vm0, %v2311_v38  ;;  %v2313_v38 = vsel %vm1236_vm14, 1.0, %v2585_v37 }
 0x1ea   :  { %v1393_v4 = vadd.f32 %v1349_v13, %v1161_v25  ;;  %2391 = vmatmul.msk.f32.gmra.mxu3 %vm252_vm0, %v2375_v42 }
 0x1ec   :  { %v1625_v59 = vadd.f32 %v1581_v6, %v1393_v4 }
 0x1ed   :  { %v1680_v15 = vpop.permute.xlu2 %1679  ;;  %v1454_v43 = vpop.permute.xlu0 %1453 }
 0x1ee   :  { %v3479_v40 = vadd.f32 %v1813_v0, %v1625_v59  ;;  %vm1700_vm11 = vcmp.eq.s32.totalorder %v1680_v15, %v2750_v32  ;;  %v1584_v9 = vpop.f32.mrf.mxu2  ;;  %vm1470_vm4 = vcmp.eq.s32.totalorder %v1454_v43, %v2750_v32 }
 0x1ef   :  { %v2377_v47 = vsel %vm1700_vm11, 1.0, %v2585_v37 }
 0x1f0   :  { %v1445_v45 = vpop.permute.xlu1 %1444  ;;  %v1816_v24 = vpop.f32.mrf.mxu3 }
 0x1f1   :  { %vm1467_vm10 = vcmp.eq.s32.totalorder %v1445_v45, %v2750_v32  ;;  %v1352_v11 = vpop.f32.mrf.mxu1 }
 0x1f2   :  { %v2344_v49 = vsel %vm1467_vm10, 1.0, %v2585_v37  ;;  %v1120_v2 = vpop.f32.mrf.mxu0  ;;  %2392 = vmatmul.msk.f32.gmra.mxu3 %vm252_vm0, %v2376_v27  ;;  %v447_v27 = vadd.f32 %v3178_v30, %v3223_v48  ;;  %v450_v30 = vadd.f32 %v3199_v39, %v3241_v18 }
 0x1f3   :  { %v1162_v8 = vadd.f32 %v1120_v2, %v930_v56  ;;  %2360 = vmatmul.msk.f32.gmra.mxu2 %vm252_vm0, %v2344_v49 }
 0x1f4   :  { %v700_v45 = vadd.f32 %v3287_v51, %v447_v27  ;;  %v701_v51 = vadd.f32 %v3301_v10, %v450_v30 }
 0x1f5   :  { %v1394_v26 = vadd.f32 %v1352_v11, %v1162_v8  ;;  %v2347_v11 = vsel %vm1470_vm4, 1.0, %v2585_v37 }
 0x1f6   :  { %v987_v60 = vpop.permute.xlu2 %986  ;;  %v932_v56 = vadd.f32 %v3298_v50, %v700_v45 }
 0x1f7   :  { %v1626_v44 = vadd.f32 %v1584_v9, %v1394_v26  ;;  %vm1005_vm2 = vcmp.eq.s32.totalorder %v987_v60, %v2750_v32 }
 0x1f8   :  { %v2282_v4 = vsel %vm1005_vm2, 1.0, %v2585_v37 }
 0x1f9   :  { %v3496_v12 = vadd.f32 %v1816_v24, %v1626_v44  ;;  %v1213_v29 = vpop.permute.xlu1 %1212  ;;  %v1355_v3 = vpop.f32.mrf.mxu1  ;;  %v933_v44 = vadd.f32 %v3317_v62, %v701_v51 }
 0x1fa   :  { %vm1235_vm13 = vcmp.eq.s32.totalorder %v1213_v29, %v2750_v32  ;;  %v1123_v16 = vpop.f32.mrf.mxu0  ;;  %2393 = vmatmul.msk.f32.gmra.mxu3 %vm252_vm0, %v2377_v47 }
 0x1fb   :  { %v2312_v21 = vsel %vm1235_vm13, 1.0, %v2585_v37  ;;  %v1163_v33 = vadd.f32 %v1123_v16, %v931_v5  ;;  %2361 = vmatmul.msk.f32.gmra.mxu2 %vm252_vm0, %v2345_v23 }
 0x1fc   :  { %2328 = vmatmul.msk.f32.gmra.mxu1 %vm252_vm0, %v2312_v21 }
 0x1fd   :  { %v1395_v35 = vadd.f32 %v1355_v3, %v1163_v33 }
 0x1ff   :  { %v1219_v42 = vpop.permute.xlu2 %1218 }
 0x200   :  { %vm1237_vm1 = vcmp.eq.s32.totalorder %v1219_v42, %v2750_v32 }
 0x201   :  { %v1587_v7 = vpop.f32.mrf.mxu2  ;;  %v2314_v54 = vsel %vm1237_vm1, 1.0, %v2585_v37 }
 0x202   :  { %v1627_v46 = vadd.f32 %v1587_v7, %v1395_v35  ;;  %v984_v25 = vpop.permute.xlu1 %983  ;;  %v702_v35 = vadd.f32 %v3319_v17, %v453_v63 }
 0x203   :  { %vm1004_vm15 = vcmp.eq.s32.totalorder %v984_v25, %v2750_v32 }
 0x204   :  { %v2281_v13 = vsel %vm1004_vm15, 1.0, %v2585_v37  ;;  %2329 = vmatmul.msk.f32.gmra.mxu1 %vm252_vm0, %v2313_v38  ;;  %v934_v38 = vadd.f32 %v3335_v36, %v702_v35 }
 0x205   :  { %2297 = vmatmul.msk.f32.gmra.mxu0 %vm252_vm0, %v2281_v13 }
 0x208   :  { %v1686_v8 = vpop.permute.xlu2 %1685 }
 0x209   :  { %v1590_v9 = vpop.f32.mrf.mxu2  ;;  %vm1702_vm6 = vcmp.eq.s32.totalorder %v1686_v8, %v2750_v32 }
 0x20a   :  { %v1819_v6 = vpop.f32.mrf.mxu3  ;;  %v2379_v23 = vsel %vm1702_vm6, 1.0, %v2585_v37 }
 0x20b   :  { %v3513_v0 = vadd.f32 %v1819_v6, %v1627_v46  ;;  %v1451_v59 = vpop.permute.xlu1 %1450 }
 0x20c   :  { %vm1469_vm3 = vcmp.eq.s32.totalorder %v1451_v59, %v2750_v32  ;;  %2330 = vmatmul.msk.f32.gmra.mxu1 %vm252_vm0, %v2314_v54 }
 0x20d   :  { %v2346_v34 = vsel %vm1469_vm3, 1.0, %v2585_v37  ;;  %2298 = vmatmul.msk.f32.gmra.mxu0 %vm252_vm0, %v2282_v4  ;;  %v1126_v15 = vpop.f32.mrf.mxu0 }
 0x20e   :  { %2362 = vmatmul.msk.f32.gmra.mxu2 %vm252_vm0, %v2346_v34  ;;  %v1164_v2 = vadd.f32 %v1126_v15, %v932_v56 }
 0x211   :  { %v1593_v10 = vpop.f32.mrf.mxu2 }
 0x212   :  { %v1822_v14 = vpop.f32.mrf.mxu3 }
 0x214   :  { %v1683_v49 = vpop.permute.xlu1 %1682 }
 0x215   :  { %vm1701_vm5 = vcmp.eq.s32.totalorder %v1683_v49, %v2750_v32  ;;  %v1129_v24 = vpop.f32.mrf.mxu0 }
 0x216   :  { %v2378_v55 = vsel %vm1701_vm5, 1.0, %v2585_v37  ;;  %v1358_v26 = vpop.f32.mrf.mxu1  ;;  %2363 = vmatmul.msk.f32.gmra.mxu2 %vm252_vm0, %v2347_v11  ;;  %v1165_v5 = vadd.f32 %v1129_v24, %v933_v44 }
 0x217   :  { %v1396_v48 = vadd.f32 %v1358_v26, %v1164_v2  ;;  %2394 = vmatmul.msk.f32.gmra.mxu3 %vm252_vm0, %v2378_v55 }
 0x219   :  { %v1628_v50 = vadd.f32 %v1590_v9, %v1396_v48 }
 0x21b   :  { %v3535_v47 = vadd.f32 %v1822_v14, %v1628_v50 }
 0x21d   :  { %v990_v29 = vpop.permute.xlu1 %989  ;;  %v1132_v7 = vpop.f32.mrf.mxu0 }
 0x21e   :  { %vm1006_vm7 = vcmp.eq.s32.totalorder %v990_v29, %v2750_v32  ;;  %v1361_v39 = vpop.f32.mrf.mxu1  ;;  %v1166_v46 = vadd.f32 %v1132_v7, %v934_v38 }
 0x21f   :  { %v2283_v18 = vsel %vm1006_vm7, 1.0, %v2585_v37  ;;  %v1397_v60 = vadd.f32 %v1361_v39, %v1165_v5  ;;  %2395 = vmatmul.msk.f32.gmra.mxu3 %vm252_vm0, %v2379_v23 }
 0x220   :  { %2299 = vmatmul.msk.f32.gmra.mxu0 %vm252_vm0, %v2283_v18 }
 0x221   :  { %v1629_v16 = vadd.f32 %v1593_v10, %v1397_v60 }
 0x225   :  { %v1825_v3 = vpop.f32.mrf.mxu3 }
 0x226   :  { %v3542_v62 = vadd.f32 %v1825_v3, %v1629_v16  ;;  %v1222_v21 = vpop.permute.xlu1 %1221  ;;  %v3559_v3 = vld [vmem:[#allocation2 + $0x1c8] ss:$0 sm:$0xff] }
 0x227   :  { %vm1238_vm8 = vcmp.eq.s32.totalorder %v1222_v21, %v2750_v32 }
 0x228   :  { %v2315_v33 = vsel %vm1238_vm8, 1.0, %v2585_v37 }
 0x229   :  { %2331 = vmatmul.msk.f32.gmra.mxu1 %vm252_vm0, %v2315_v33  ;;  %vm2050_vm0 = vcmask 130048  }
 0x22d   :  { %v1828_v54 = vpop.f32.mrf.mxu3 }
 0x22e   :  { %v1596_v13 = vpop.f32.mrf.mxu2 }
 0x231   :  { %v1364_v25 = vpop.f32.mrf.mxu1 }
 0x232   :  { %v1398_v42 = vadd.f32 %v1364_v25, %v1166_v46 }
 0x234   :  { %v1630_v4 = vadd.f32 %v1596_v13, %v1398_v42 }
 0x235   :  { %v1831_v27 = vpop.f32.mrf.mxu3 }
 0x236   :  { %v1862_v6 = vadd.f32 %v1828_v54, %v1630_v4  ;;  %v1599_v43 = vpop.f32.mrf.mxu2 }
 0x238   :  { %v3576_v4 = vadd.f32 %v3559_v3, %v1862_v6 }
 0x239   :  { %v1367_v32 = vpop.f32.mrf.mxu1 }
 0x23a   :  { %v1135_v59 = vpop.f32.mrf.mxu0 }
 0x23b   :  { %v1167_v37 = vadd.f32 %v1135_v59, %v3350_v19 }
 0x23d   :  { %v1399_v34 = vadd.f32 %v1367_v32, %v1167_v37 }
 0x23f   :  { %v1631_v22 = vadd.f32 %v1599_v43, %v1399_v34 }
 0x241   :  { %v3552_v20 = vadd.f32 %v1831_v27, %v1631_v22  ;;  %v1370_v15 = vpop.f32.mrf.mxu1 }
 0x242   :  { %v1138_v17 = vpop.f32.mrf.mxu0 }
 0x243   :  { %v1168_v36 = vadd.f32 %v1138_v17, %v3367_v28 }
 0x245   :  { %v1400_v45 = vadd.f32 %v1370_v15, %v1168_v36 }
 0x249   :  { %v1602_v56 = vpop.f32.mrf.mxu2 }
 0x24a   :  { %v1632_v11 = vadd.f32 %v1602_v56, %v1400_v45 }
 0x251   :  { %v1605_v26 = vpop.f32.mrf.mxu2 }
 0x252   :  { %v1834_v49 = vpop.f32.mrf.mxu3 }
 0x253   :  { %v3555_v2 = vadd.f32 %v1834_v49, %v1632_v11 }
 0x255   :  { %v1141_v8 = vpop.f32.mrf.mxu0 }
 0x256   :  { %v1169_v5 = vadd.f32 %v1141_v8, %v3378_v52 }
 0x259   :  { %v1608_v48 = vpop.f32.mrf.mxu2 }
 0x25a   :  { %v1837_v19 = vpop.f32.mrf.mxu3 }
 0x25d   :  { %v1144_v9 = vpop.f32.mrf.mxu0 }
 0x25e   :  { %v1373_v55 = vpop.f32.mrf.mxu1  ;;  %v1170_v13 = vadd.f32 %v1144_v9, %v3392_v61 }
 0x25f   :  { %v1401_v39 = vadd.f32 %v1373_v55, %v1169_v5 }
 0x261   :  { %v1633_v21 = vadd.f32 %v1605_v26, %v1401_v39 }
 0x263   :  { %v1865_v35 = vadd.f32 %v1837_v19, %v1633_v21  ;;  %v1881_v19 = vadd.f32 %v3559_v3, %v3552_v20  ;;  %v1882_v20 = vadd.f32 %v3559_v3, %v3555_v2  ;;  %v1874_v2 = vadd.f32 %v3559_v3, %v3457_v31 }
 0x265   :  { %v1147_v50 = vpop.f32.mrf.mxu0 }
 0x266   :  { %v1376_v30 = vpop.f32.mrf.mxu1  ;;  %v1171_v15 = vadd.f32 %v1147_v50, %v3405_v58  ;;  %v1897_v58 = vmax.f32 %v1881_v19, 0.0 }
 0x267   :  { %v1402_v32 = vadd.f32 %v1376_v30, %v1170_v13 }
 0x269   :  { %v1634_v43 = vadd.f32 %v1608_v48, %v1402_v32 }
 0x26d   :  { %v1840_v51 = vpop.f32.mrf.mxu3 }
 0x26e   :  { %v1866_v22 = vadd.f32 %v1840_v51, %v1634_v43 }
 0x270   :  { %v3585_v6 = vadd.f32 %v3559_v3, %v1866_v22 }
 0x272   :  { %v1900_v11 = vmax.f32 %v3585_v6, 0.0 }
 0x275   :  { %v1843_v44 = vpop.f32.mrf.mxu3 }
 0x276   :  { %v1611_v14 = vpop.f32.mrf.mxu2 }
 0x279   :  { %v1379_v24 = vpop.f32.mrf.mxu1 }
 0x27a   :  { %v1403_v49 = vadd.f32 %v1379_v24, %v1171_v15  ;;  %v1878_v24 = vadd.f32 %v3559_v3, %v3535_v47  ;;  %v1877_v47 = vadd.f32 %v3559_v3, %v3513_v0  ;;  %v1876_v0 = vadd.f32 %v3559_v3, %v3496_v12 }
 0x27c   :  { %v1635_v9 = vadd.f32 %v1611_v14, %v1403_v49  ;;  %v1898_v14 = vmax.f32 %v1882_v20, 0.0 }
 0x27d   :  { %v1846_v10 = vpop.f32.mrf.mxu3 }
 0x27e   :  { %v1614_v60 = vpop.f32.mrf.mxu2  ;;  %v1867_v51 = vadd.f32 %v1843_v44, %v1635_v9  ;;  %v1879_v44 = vadd.f32 %v3559_v3, %v3542_v62 }
 0x280   :  { %v1885_v50 = vadd.f32 %v3559_v3, %v1867_v51  ;;  %v1895_v5 = vmax.f32 %v1879_v44, 0.0 }
 0x281   :  { %v1382_v28 = vpop.f32.mrf.mxu1 }
 0x282   :  { %v1150_v23 = vpop.f32.mrf.mxu0 }
 0x283   :  { %v1172_v29 = vadd.f32 %v1150_v23, %v3413_v57  ;;  %v3567_v57 = vadd.f32 %v3559_v3, %v1865_v35  ;;  %v1901_v23 = vmax.f32 %v1885_v50, 0.0 }
 0x285   :  { %v1404_v18 = vadd.f32 %v1382_v28, %v1172_v29  ;;  %v1899_v25 = vmax.f32 %v3567_v57, 0.0  ;;  %v1894_v28 = vmax.f32 %v1878_v24, 0.0  ;;  %v1893_v29 = vmax.f32 %v1877_v47, 0.0 }
 0x287   :  { %v1636_v16 = vadd.f32 %v1614_v60, %v1404_v18  ;;  %v1890_v60 = vmax.f32 %v1874_v2, 0.0 }
 0x289   :  { %v1868_v33 = vadd.f32 %v1846_v10, %v1636_v16  ;;  %v1385_v46 = vpop.f32.mrf.mxu1 }
 0x28a   :  { %v1153_v52 = vpop.f32.mrf.mxu0 }
 0x28b   :  { %v3562_v63 = vadd.f32 %v3559_v3, %v1868_v33  ;;  %v1173_v38 = vadd.f32 %v1153_v52, %v3422_v41  ;;  %v1896_v41 = vmax.f32 %v3576_v4, 0.0 }
 0x28d   :  { %v1902_v7 = vmax.f32 %v3562_v63, 0.0  ;;  %v1405_v54 = vadd.f32 %v1385_v46, %v1173_v38  ;;  %v1892_v63 = vmax.f32 %v1876_v0, 0.0 }
 0x28f   :  { %1931 = vrot.lane.b32.xlu1 %v1902_v7, %s2590_s0 }
 0x291   :  { %v1617_v42 = vpop.f32.mrf.mxu2 }
 0x292   :  { %v1637_v59 = vadd.f32 %v1617_v42, %v1405_v54 }
 0x297   :  { %1925 = vrot.lane.b32.xlu1 %v1899_v25, %s2590_s0 }
 0x299   :  { %v1620_v56 = vpop.f32.mrf.mxu2 }
 0x29a   :  { %v1849_v37 = vpop.f32.mrf.mxu3 }
 0x29b   :  { %v1869_v34 = vadd.f32 %v1849_v37, %v1637_v59 }
 0x29d   :  { %v1887_v27 = vadd.f32 %v3559_v3, %v1869_v34  ;;  %v1156_v61 = vpop.f32.mrf.mxu0 }
 0x29e   :  { %v1174_v36 = vadd.f32 %v1156_v61, %v3434_v53 }
 0x29f   :  { %v1903_v17 = vmax.f32 %v1887_v27, 0.0  ;;  %1919 = vrot.lane.b32.xlu1 %v1896_v41, %s2590_s0 }
 0x2a1   :  { %1933 = vrot.lane.b32.xlu0 %v1903_v17, %s2590_s0 }
 0x2a2   :  { %v1852_v55 = vpop.f32.mrf.mxu3 }
 0x2a6   :  { %v1388_v45 = vpop.f32.mrf.mxu1 }
 0x2a7   :  { %v1406_v8 = vadd.f32 %v1388_v45, %v1174_v36 }
 0x2a9   :  { %v1638_v26 = vadd.f32 %v1620_v56, %v1406_v8  ;;  %1927 = vrot.lane.b32.xlu0 %v1900_v11, %s2590_s0 }
 0x2ab   :  { %v1870_v30 = vadd.f32 %v1852_v55, %v1638_v26 }
 0x2ad   :  { %v1888_v48 = vadd.f32 %v3559_v3, %v1870_v30 }
 0x2af   :  { %v1904_v53 = vmax.f32 %v1888_v48, 0.0 }
 0x2b1   :  { %1921 = vrot.lane.b32.xlu0 %v1897_v58, %s2590_s0  ;;  %1935 = vrot.lane.b32.xlu2 %v1904_v53, %s2590_s0 }
 0x2b9   :  { %1915 = vrot.lane.b32.xlu0 %v1894_v28, %s2590_s0  ;;  %1929 = vrot.lane.b32.xlu2 %v1901_v23, %s2590_s0 }
 0x2c1   :  { %1923 = vrot.lane.b32.xlu2 %v1898_v14, %s2590_s0 }
 0x2c9   :  { %1917 = vrot.lane.b32.xlu2 %v1895_v5, %s2590_s0 }
 0x2d1   :  { %1913 = vrot.lane.b32.xlu2 %v1893_v29, %s2590_s0 }
 0x301   :  { %v1932_v39 = vpop.permute.xlu1 %1931 }
 0x302   :  { %v1950_v18 = vmax.f32 %v1902_v7, %v1932_v39  ;;  %v1875_v7 = vadd.f32 %v3559_v3, %v3479_v40 }
 0x304   :  { %1979 = vrot.lane.b32.xlu2 %v1950_v18, %s2591_s8  ;;  %v1891_v38 = vmax.f32 %v1875_v7, 0.0 }
 0x309   :  { %v1926_v16 = vpop.permute.xlu1 %1925 }
 0x30a   :  { %v1947_v21 = vmax.f32 %v1899_v25, %v1926_v16  ;;  %v1873_v25 = vadd.f32 %v3559_v3, %v3448_v1 }
 0x30b   :  { %v1936_v10 = vpop.permute.xlu2 %1935 }
 0x30c   :  { %v1952_v62 = vmax.f32 %v1904_v53, %v1936_v10  ;;  %1907 = vrot.lane.b32.xlu2 %v1890_v60, %s2590_s0  ;;  %v1889_v42 = vmax.f32 %v1873_v25, 0.0 }
 0x30e   :  { %1983 = vrot.lane.b32.xlu1 %v1952_v62, %s2591_s8 }
 0x311   :  { %v1920_v31 = vpop.permute.xlu1 %1919 }
 0x312   :  { %v1944_v12 = vmax.f32 %v1896_v41, %v1920_v31 }
 0x313   :  { %v1934_v33 = vpop.permute.xlu0 %1933  ;;  %v1930_v52 = vpop.permute.xlu2 %1929 }
 0x314   :  { %v1951_v35 = vmax.f32 %v1903_v17, %v1934_v33  ;;  %1973 = vrot.lane.b32.xlu2 %v1947_v21, %s2591_s8  ;;  %v1949_v57 = vmax.f32 %v1901_v23, %v1930_v52 }
 0x316   :  { %1911 = vrot.lane.b32.xlu1 %v1892_v63, %s2590_s0  ;;  %1981 = vrot.lane.b32.xlu0 %v1951_v35, %s2591_s8 }
 0x31b   :  { %v1928_v46 = vpop.permute.xlu0 %1927  ;;  %v1924_v54 = vpop.permute.xlu2 %1923 }
 0x31c   :  { %1967 = vrot.lane.b32.xlu2 %v1944_v12, %s2591_s8  ;;  %v1948_v13 = vmax.f32 %v1900_v11, %v1928_v46  ;;  %v1946_v4 = vmax.f32 %v1898_v14, %v1924_v54 }
 0x31e   :  { %1977 = vrot.lane.b32.xlu1 %v1949_v57, %s2591_s8  ;;  %1909 = vrot.lane.b32.xlu0 %v1891_v38, %s2590_s0 }
 0x323   :  { %v1922_v40 = vpop.permute.xlu0 %1921  ;;  %v1918_v59 = vpop.permute.xlu2 %1917 }
 0x324   :  { %v1945_v32 = vmax.f32 %v1897_v58, %v1922_v40  ;;  %v1943_v34 = vmax.f32 %v1895_v5, %v1918_v59 }
 0x326   :  { %1905 = vrot.lane.b32.xlu1 %v1889_v42, %s2590_s0  ;;  %1975 = vrot.lane.b32.xlu0 %v1948_v13, %s2591_s8 }
 0x32b   :  { %v1916_v37 = vpop.permute.xlu0 %1915  ;;  %v1914_v1 = vpop.permute.xlu2 %1913 }
 0x32c   :  { %v1942_v41 = vmax.f32 %v1894_v28, %v1916_v37  ;;  %v1941_v3 = vmax.f32 %v1893_v29, %v1914_v1 }
 0x32e   :  { %1971 = vrot.lane.b32.xlu0 %v1946_v4, %s2591_s8  ;;  %1969 = vrot.lane.b32.xlu1 %v1945_v32, %s2591_s8 }
 0x336   :  { %1965 = vrot.lane.b32.xlu0 %v1943_v34, %s2591_s8  ;;  %1963 = vrot.lane.b32.xlu1 %v1942_v41, %s2591_s8 }
 0x33e   :  { %1961 = vrot.lane.b32.xlu0 %v1941_v3, %s2591_s8 }
 0x35e   :  { %v1980_v43 = vpop.permute.xlu2 %1979 }
 0x35f   :  { %v3638_v27 = vmax.f32 %v1950_v18, %v1980_v43 }
 0x361   :  { %2027 = vrot.lane.b32.xlu0 %v3638_v27, %s2592_s9 }
 0x366   :  { %v1908_v22 = vpop.permute.xlu2 %1907 }
 0x367   :  { %v1938_v17 = vmax.f32 %v1890_v60, %v1908_v22 }
 0x369   :  { %1955 = vrot.lane.b32.xlu0 %v1938_v17, %s2591_s8 }
 0x36e   :  { %v1974_v61 = vpop.permute.xlu2 %1973 }
 0x36f   :  { %v3643_v6 = vmax.f32 %v1947_v21, %v1974_v61 }
 0x371   :  { %2021 = vrot.lane.b32.xlu0 %v3643_v6, %s2592_s9 }
 0x376   :  { %v1968_v15 = vpop.permute.xlu2 %1967 }
 0x377   :  { %v3647_v36 = vmax.f32 %v1944_v12, %v1968_v15 }
 0x379   :  { %2015 = vrot.lane.b32.xlu0 %v3647_v36, %s2592_s9 }
 0x380   :  { %v1984_v45 = vpop.permute.xlu1 %1983 }
 0x381   :  { %v2000_v56 = vmax.f32 %v1952_v62, %v1984_v45  ;;  %v2049_v45 = vld [vmem:[#allocation2 + $0x1c0] sm:$0xff] }
 0x383   :  { %2031 = vrot.lane.b32.xlu2 %v2000_v56, %s2592_s9 }
 0x388   :  { %v1912_v11 = vpop.permute.xlu1 %1911  ;;  %v1982_v49 = vpop.permute.xlu0 %1981 }
 0x389   :  { %v1940_v8 = vmax.f32 %v1892_v63, %v1912_v11  ;;  %v1999_v55 = vmax.f32 %v1951_v35, %v1982_v49 }
 0x38b   :  { %1959 = vrot.lane.b32.xlu2 %v1940_v8, %s2591_s8  ;;  %2029 = vrot.lane.b32.xlu1 %v1999_v55, %s2592_s9 }
 0x390   :  { %v1978_v26 = vpop.permute.xlu1 %1977  ;;  %v1910_v19 = vpop.permute.xlu0 %1909 }
 0x391   :  { %v1997_v9 = vmax.f32 %v1949_v57, %v1978_v26  ;;  %v1939_v30 = vmax.f32 %v1891_v38, %v1910_v19 }
 0x393   :  { %2025 = vrot.lane.b32.xlu2 %v1997_v9, %s2592_s9  ;;  %1957 = vrot.lane.b32.xlu1 %v1939_v30, %s2591_s8 }
 0x398   :  { %v1906_v48 = vpop.permute.xlu1 %1905  ;;  %v1976_v58 = vpop.permute.xlu0 %1975 }
 0x399   :  { %v1937_v51 = vmax.f32 %v1889_v42, %v1906_v48  ;;  %v1996_v53 = vmax.f32 %v1948_v13, %v1976_v58 }
 0x39b   :  { %1953 = vrot.lane.b32.xlu2 %v1937_v51, %s2591_s8  ;;  %2023 = vrot.lane.b32.xlu1 %v1996_v53, %s2592_s9 }
 0x3a0   :  { %v1970_v50 = vpop.permute.xlu1 %1969  ;;  %v1972_v24 = vpop.permute.xlu0 %1971 }
 0x3a1   :  { %v1993_v23 = vmax.f32 %v1945_v32, %v1970_v50  ;;  %v1994_v28 = vmax.f32 %v1946_v4, %v1972_v24 }
 0x3a3   :  { %2017 = vrot.lane.b32.xlu2 %v1993_v23, %s2592_s9  ;;  %2019 = vrot.lane.b32.xlu1 %v1994_v28, %s2592_s9 }
 0x3a8   :  { %v1964_v20 = vpop.permute.xlu1 %1963  ;;  %v1966_v14 = vpop.permute.xlu0 %1965 }
 0x3a9   :  { %v1990_v44 = vmax.f32 %v1942_v41, %v1964_v20  ;;  %v1991_v5 = vmax.f32 %v1943_v34, %v1966_v14 }
 0x3ab   :  { %2011 = vrot.lane.b32.xlu2 %v1990_v44, %s2592_s9  ;;  %2013 = vrot.lane.b32.xlu1 %v1991_v5, %s2592_s9 }
 0x3b0   :  { %v1962_v47 = vpop.permute.xlu0 %1961 }
 0x3b1   :  { %v1989_v29 = vmax.f32 %v1941_v3, %v1962_v47 }
 0x3b3   :  { %2009 = vrot.lane.b32.xlu0 %v1989_v29, %s2592_s9 }
 0x3d3   :  { %v2028_v39 = vpop.permute.xlu0 %2027 }
 0x3d4   :  { %v2046_v31 = vmax.f32 %v3638_v27, %v2028_v39 }
 0x3db   :  { %v1956_v18 = vpop.permute.xlu0 %1955 }
 0x3dc   :  { %v1986_v2 = vmax.f32 %v1938_v17, %v1956_v18 }
 0x3dd   :  { %v2032_v60 = vpop.permute.xlu2 %2031 }
 0x3de   :  { %v2048_v10 = vmax.f32 %v2000_v56, %v2032_v60  ;;  %2003 = vrot.lane.b32.xlu0 %v1986_v2, %s2592_s9 }
 0x3e0   :  { %2396 = vmatpush.xpose.msk.msra.mxu0 %vm2050_vm0, %v2048_v10 }
 0x3e3   :  { %v2022_v46 = vpop.permute.xlu0 %2021 }
 0x3e4   :  { %v2043_v25 = vmax.f32 %v3643_v6, %v2022_v46 }
 0x3e5   :  { %v1960_v62 = vpop.permute.xlu2 %1959 }
 0x3e6   :  { %v1988_v16 = vmax.f32 %v1940_v8, %v1960_v62 }
 0x3e8   :  { %2007 = vrot.lane.b32.xlu1 %v1988_v16, %s2592_s9 }
 0x3eb   :  { %v2016_v4 = vpop.permute.xlu0 %2015 }
 0x3ec   :  { %v2040_v32 = vmax.f32 %v3647_v36, %v2016_v4 }
 0x3ed   :  { %v2026_v0 = vpop.permute.xlu2 %2025 }
 0x3ee   :  { %v2045_v52 = vmax.f32 %v1997_v9, %v2026_v0 }
 0x3f5   :  { %v1954_v21 = vpop.permute.xlu2 %1953 }
 0x3f6   :  { %v1985_v33 = vmax.f32 %v1937_v51, %v1954_v21 }
 0x3f8   :  { %2001 = vrot.lane.b32.xlu1 %v1985_v33, %s2592_s9 }
 0x3fd   :  { %v2030_v63 = vpop.permute.xlu1 %2029  ;;  %v2018_v54 = vpop.permute.xlu2 %2017 }
 0x3fe   :  { %v2047_v35 = vmax.f32 %v1999_v55, %v2030_v63  ;;  %v2041_v40 = vmax.f32 %v1993_v23, %v2018_v54 }
 0x400   :  { %2397 = vmatpush.xpose.msk.msra.mxu0 %vm2050_vm0, %v2047_v35 }
 0x404   :  { %2398 = vmatpush.xpose.msk.msra.mxu0 %vm2050_vm0, %v2046_v31 }
 0x405   :  { %v1958_v7 = vpop.permute.xlu1 %1957  ;;  %v2012_v34 = vpop.permute.xlu2 %2011 }
 0x406   :  { %v1987_v12 = vmax.f32 %v1939_v30, %v1958_v7  ;;  %v2038_v41 = vmax.f32 %v1990_v44, %v2012_v34 }
 0x408   :  { %2005 = vrot.lane.b32.xlu2 %v1987_v12, %s2592_s9  ;;  %2399 = vmatpush.xpose.msk.msra.mxu0 %vm2050_vm0, %v2045_v52 }
 0x40d   :  { %v2024_v38 = vpop.permute.xlu1 %2023 }
 0x40e   :  { %v2044_v57 = vmax.f32 %v1996_v53, %v2024_v38 }
 0x410   :  { %2400 = vmatpush.xpose.msk.msra.mxu0 %vm2050_vm0, %v2044_v57 }
 0x414   :  { %2401 = vmatpush.xpose.msk.msra.mxu0 %vm2050_vm0, %v2043_v25 }
 0x415   :  { %v2020_v42 = vpop.permute.xlu1 %2019 }
 0x416   :  { %v2042_v13 = vmax.f32 %v1994_v28, %v2020_v42 }
 0x418   :  { %2402 = vmatpush.xpose.msk.msra.mxu0 %vm2050_vm0, %v2042_v13 }
 0x41c   :  { %2403 = vmatpush.xpose.msk.msra.mxu0 %vm2050_vm0, %v2041_v40 }
 0x41d   :  { %v2014_v59 = vpop.permute.xlu1 %2013 }
 0x41e   :  { %v2039_v37 = vmax.f32 %v1991_v5, %v2014_v59 }
 0x420   :  { %2404 = vmatpush.xpose.msk.msra.mxu0 %vm2050_vm0, %v2040_v32 }
 0x424   :  { %2405 = vmatpush.xpose.msk.msra.mxu0 %vm2050_vm0, %v2039_v37 }
 0x425   :  { %v2010_v1 = vpop.permute.xlu0 %2009 }
 0x426   :  { %v2037_v3 = vmax.f32 %v1989_v29, %v2010_v1 }
 0x428   :  { %2406 = vmatpush.xpose.msk.msra.mxu0 %vm2050_vm0, %v2038_v41 }
 0x42c   :  { %2407 = vmatpush.xpose.msk.msra.mxu0 %vm2050_vm0, %v2037_v3 }
 0x450   :  { %v2004_v61 = vpop.permute.xlu0 %2003 }
 0x451   :  { %v2034_v6 = vmax.f32 %v1986_v2, %v2004_v61 }
 0x45a   :  { %v2008_v43 = vpop.permute.xlu1 %2007 }
 0x45b   :  { %v2036_v27 = vmax.f32 %v1988_v16, %v2008_v43 }
 0x45d   :  { %2408 = vmatpush.xpose.msk.msra.mxu0 %vm2050_vm0, %v2036_v27 }
 0x462   :  { %v2006_v22 = vpop.permute.xlu2 %2005 }
 0x463   :  { %v2035_v17 = vmax.f32 %v1987_v12, %v2006_v22 }
 0x465   :  { %2409 = vmatpush.xpose.msk.msra.mxu0 %vm2050_vm0, %v2035_v17 }
 0x469   :  { %2410 = vmatpush.xpose.msk.msra.mxu0 %vm2050_vm0, %v2034_v6 }
 0x46a   :  { %v2002_v15 = vpop.permute.xlu1 %2001 }
 0x46b   :  { %v2033_v36 = vmax.f32 %v1985_v33, %v2002_v15 }
 0x46d   :  { %2411 = vmatpush.xpose.msk.msra.mxu0 %vm2050_vm0, %v2033_v36 }
 0x470   :  { %2412 = vmatmul.msk.f32.vlgmr.msra.gmra.mxu0 %vm2050_vm0, %v2049_v45 }
 0x4ed   :  { %v2119_v56 = vpop.f32.mrf.mxu0 }
 0x4ee   :  { %2122 = vst [vmem:[#allocation5] sm:$0xff] %v2119_v56 }
 0x4ef   :  { %2133 = dma.vmem_to_hbm [thread:$0]  %s2129_s11, 128, %s2131_s14, [#allocation4]  }
 0x4f0   :  { %2576 = dma.done.wait [#allocation4], 128  }
 0x4f1   :  { %2577 = vsyncadd [#allocation4], 4294967168 }
 0x4f2   :  { %2138 = vsyncpa [#allocation3], 1 }
 0x4f3   :  { %2139 = vsyncpa [#allocation4], 1 }

</bundles_post_ra>
